<compile_context>
chip_gen: v7x
topology: tpu7x:2x2x1
jax: 0.10.0
libtpu: 0.0.40
codegen_flags: <defaults>
</compile_context>

<pallas_src>
import jax
import jax.numpy as jnp
from jax.experimental import pallas as pl
from jax.experimental.pallas import tpu as pltpu

D_IN = 1024     # fixed by nn.Linear(1024, 256)
D_HID = 256     # fixed by nn.Linear(1024, 256)
N_PAD = 128     # lane-dense padded class dimension (n_out <= 128)
NEG_INF = -1e30


def classifier_kernel(x_ref, w1_ref, b1_ref, w2_ref, b2_ref, out_ref):
    """Fused MLP head + softmax on one batch tile.

    x_ref   : [TB, 1024]   bf16 pooled features
    w1_ref  : [1024, 256]  bf16 first linear weight (in x out layout)
    b1_ref  : [1, 256]     f32
    w2_ref  : [256, 128]   bf16 second linear weight, zero-padded past n_out
    b2_ref  : [1, 128]     f32 bias, -1e30 on pad columns
    out_ref : [TB, 128]    f32 softmax probabilities (pad columns == 0)
    """
    # Linear(1024, 256): bf16 operands on the MXU, f32 accumulation.
    h = jnp.dot(x_ref[...], w1_ref[...], preferred_element_type=jnp.float32)
    h = jnp.maximum(h + b1_ref[...], 0.0)

    # Linear(256, n_out) padded to 128 lanes: bf16 operands, f32 accumulation.
    logits = jnp.dot(h.astype(jnp.bfloat16), w2_ref[...],
                     preferred_element_type=jnp.float32) + b2_ref[...]

    # Numerically-stable softmax over dim=1; pad columns exp() to 0.
    # Exact f32 division so every row sums to 1 (no approx-reciprocal drift).
    m = jnp.max(logits, axis=1, keepdims=True)
    e = jnp.exp(logits - m)
    denom = jnp.sum(e, axis=1, keepdims=True)
    out_ref[...] = (e / denom).astype(out_ref.dtype)


def _round_up(x, m):
    return (x + m - 1) // m * m


def _build_head_call(TB, grid, B_pad, x_bytes, single_buffer_weights):
    """Construct the pallas_call for the classifier head."""

    def resident_spec(shape):
        # Constant index_map -> the tile is DMA'd once and stays VMEM-resident.
        if single_buffer_weights:
            return pl.BlockSpec(shape, lambda i: (0, 0),
                                pipeline_mode=pl.Buffered(1))
        return pl.BlockSpec(shape, lambda i: (0, 0))

    cost = pl.CostEstimate(
        flops=2 * B_pad * D_IN * D_HID + 2 * B_pad * D_HID * N_PAD,
        transcendentals=B_pad * N_PAD,
        bytes_accessed=(x_bytes                       # x (bf16)
                        + D_IN * D_HID * 2            # w1 (bf16)
                        + D_HID * 4                   # b1 (f32)
                        + D_HID * N_PAD * 2           # w2 (bf16)
                        + N_PAD * 4                   # b2 (f32)
                        + B_pad * N_PAD * 4),         # out (f32)
    )

    return pl.pallas_call(
        classifier_kernel,
        out_shape=jax.ShapeDtypeStruct((B_pad, N_PAD), jnp.float32),
        grid_spec=pltpu.PrefetchScalarGridSpec(
            num_scalar_prefetch=0,
            grid=grid,
            in_specs=[
                pl.BlockSpec((TB, D_IN), lambda i: (i, 0)),  # x: per batch tile
                resident_spec((D_IN, D_HID)),                # w1: resident
                resident_spec((1, D_HID)),                   # b1: resident
                resident_spec((D_HID, N_PAD)),               # w2: resident
                resident_spec((1, N_PAD)),                   # b2: resident
            ],
            out_specs=pl.BlockSpec((TB, N_PAD), lambda i: (i, 0)),
        ),
        compiler_params=pltpu.CompilerParams(
            dimension_semantics=("parallel",)),
        cost_estimate=cost,
    )


def dino_classifier_head(x, w1, b1, w2, b2):
    """x: [B, 1024] pooler_output features -> [B, n_out] class probabilities."""
    B = x.shape[0]
    n_out = w2.shape[1]
    assert n_out <= N_PAD, "pad class dim to a larger multiple of 128/256 first"

    # --- host-side layout / dtype prep -----------------------------------
    x_bf = x.astype(jnp.bfloat16)
    w1_bf = w1.astype(jnp.bfloat16)
    b1_f = jnp.reshape(b1, (1, D_HID)).astype(jnp.float32)

    # Pad class dimension to 128 lanes; the -1e30 *f32* bias makes pad columns
    # vanish under softmax, so normalization over real classes is unchanged.
    w2_p = jnp.zeros((D_HID, N_PAD), jnp.bfloat16).at[:, :n_out].set(
        w2.astype(jnp.bfloat16))
    b2_p = jnp.full((1, N_PAD), NEG_INF, jnp.float32).at[0, :n_out].set(
        jnp.reshape(b2, (-1,)).astype(jnp.float32))

    # --- batch tiling ------------------------------------------------------
    # 16-aligned tiles (bf16 packs 2 rows/sublane); aim for >= 2 grid steps so
    # v7x's second TensorCore gets work; cap TB at 1024 rows so the
    # double-buffered x (2 MiB) / out (0.5 MiB) tiles plus resident weights
    # stay well inside v5e's 16 MiB scoped-VMEM default.
    B_16 = _round_up(B, 16)
    TB = min(1024, _round_up(max(B_16 // 2, 16), 16))
    B_pad = _round_up(B_16, TB)
    if B_pad != B:
        x_bf = jnp.pad(x_bf, ((0, B_pad - B), (0, 0)))
    grid = (B_pad // TB,)
    x_bytes = x_bf.size * 2

    try:
        out = _build_head_call(TB, grid, B_pad, x_bytes,
                               single_buffer_weights=True)(
            x_bf, w1_bf, b1_f, w2_p, b2_p)
    except Exception:
        # Fallback for Pallas builds that reject pl.Buffered(1) on resident
        # inputs; semantics are identical, only VMEM headroom differs.
        out = _build_head_call(TB, grid, B_pad, x_bytes,
                               single_buffer_weights=False)(
            x_bf, w1_bf, b1_f, w2_p, b2_p)

    return out[:B, :n_out]


def reference_head_f32(x, w1, b1, w2, b2):
    h = jnp.maximum(x @ w1 + b1.reshape(1, -1), 0.0)
    logits = h @ w2 + b2.reshape(1, -1)
    return jax.nn.softmax(logits, axis=1)


def reference_head_bf16(x, w1, b1, w2, b2):
    # Same bf16-operand / f32-accumulate split as the kernel.
    h = jnp.dot(x.astype(jnp.bfloat16), w1.astype(jnp.bfloat16),
                preferred_element_type=jnp.float32) + b1.reshape(1, -1)
    h = jnp.maximum(h, 0.0)
    logits = jnp.dot(h.astype(jnp.bfloat16), w2.astype(jnp.bfloat16),
                     preferred_element_type=jnp.float32) + b2.reshape(1, -1)
    return jax.nn.softmax(logits, axis=1)


if __name__ == "__main__":
    B = 8        # batch size
    N_OUT = 16   # number of classes (self.n_out)

    key = jax.random.PRNGKey(0)
    kx, kw1, kb1, kw2, kb2 = jax.random.split(key, 5)

    # Deterministic synthetic parameters (PyTorch nn.Linear-like scale).
    x = jax.random.normal(kx, (B, D_IN), dtype=jnp.float32)
    w1 = jax.random.uniform(kw1, (D_IN, D_HID), jnp.float32,
                            minval=-1.0, maxval=1.0) * (1.0 / (D_IN ** 0.5))
    b1 = jax.random.uniform(kb1, (D_HID,), jnp.float32,
                            minval=-1.0, maxval=1.0) * (1.0 / (D_IN ** 0.5))
    w2 = jax.random.uniform(kw2, (D_HID, N_OUT), jnp.float32,
                            minval=-1.0, maxval=1.0) * (1.0 / (D_HID ** 0.5))
    b2 = jax.random.uniform(kb2, (N_OUT,), jnp.float32,
                            minval=-1.0, maxval=1.0) * (1.0 / (D_HID ** 0.5))

    probs = jax.block_until_ready(dino_classifier_head(x, w1, b1, w2, b2))

    assert probs.shape == (B, N_OUT)
    # Softmax rows sum to 1 (exact f32 division in the kernel).
    assert jnp.allclose(jnp.sum(probs, axis=1), 1.0, atol=1e-4)
    # Tight check vs. a reference using the same bf16/f32 split.
    ref_bf16 = reference_head_bf16(x, w1, b1, w2, b2)
    assert jnp.allclose(probs, ref_bf16, atol=2e-3, rtol=0)
    # Loose check vs. the pure-f32 PyTorch-equivalent reference.
    ref_f32 = reference_head_f32(x, w1, b1, w2, b2)
    assert jnp.allclose(probs, ref_f32, atol=2e-2, rtol=0)

    print("KERNEL_OK")
</pallas_src>

<mosaic_0001>
module attributes {stable_mosaic.version = 11 : i64} {
  func.func @classifier_kernel(%arg0: i32, %arg1: memref<16x1024xbf16, #tpu.memory_space<vmem>>, %arg2: memref<1024x256xbf16, #tpu.memory_space<vmem>>, %arg3: memref<1x256xf32, #tpu.memory_space<vmem>>, %arg4: memref<256x128xbf16, #tpu.memory_space<vmem>>, %arg5: memref<1x128xf32, #tpu.memory_space<vmem>>, %arg6: memref<16x128xf32, #tpu.memory_space<vmem>>) attributes {dimension_semantics = [#tpu.dimension_semantics<parallel>], iteration_bounds = array<i64: 1>, scalar_prefetch = 0 : i64, scratch_operands = 0 : i64, tpu.core_type = #tpu.core_type<tc>, window_params = [{transform_indices = @transform_0, window_bounds = array<i64: 16, 1024>}, {pipeline_mode = #tpu.pipeline_mode<synchronous>, transform_indices = @transform_1, window_bounds = array<i64: 1024, 256>}, {pipeline_mode = #tpu.pipeline_mode<synchronous>, transform_indices = @transform_2, window_bounds = array<i64: 1, 256>}, {pipeline_mode = #tpu.pipeline_mode<synchronous>, transform_indices = @transform_3, window_bounds = array<i64: 256, 128>}, {pipeline_mode = #tpu.pipeline_mode<synchronous>, transform_indices = @transform_4, window_bounds = array<i64: 1, 128>}, {transform_indices = @transform_5, window_bounds = array<i64: 16, 128>}]} {
    %c0 = arith.constant 0 : index
    %c0_0 = arith.constant 0 : index
    %0 = vector.load %arg1[%c0, %c0_0] : memref<16x1024xbf16, #tpu.memory_space<vmem>>, vector<16x1024xbf16>
    %c0_1 = arith.constant 0 : index
    %c0_2 = arith.constant 0 : index
    %1 = vector.load %arg2[%c0_1, %c0_2] : memref<1024x256xbf16, #tpu.memory_space<vmem>>, vector<1024x256xbf16>
    %cst = arith.constant dense<0.000000e+00> : vector<16x256xf32>
    %2 = tpu.matmul %0, %1, %cst {dimension_numbers = #tpu.dot_dimension_numbers<[1], [0], [0], [1], [0, 0, 1, 1], [], []>} : vector<16x1024xbf16>, vector<1024x256xbf16>, vector<16x256xf32> -> vector<16x256xf32>
    %c0_3 = arith.constant 0 : index
    %c0_4 = arith.constant 0 : index
    %3 = vector.load %arg3[%c0_3, %c0_4] : memref<1x256xf32, #tpu.memory_space<vmem>>, vector<1x256xf32>
    %4 = vector.broadcast %3 : vector<1x256xf32> to vector<16x256xf32>
    %5 = arith.addf %2, %4 : vector<16x256xf32>
    %cst_5 = arith.constant 0.000000e+00 : f32
    %6 = vector.broadcast %cst_5 : f32 to vector<16x256xf32>
    %7 = arith.maximumf %5, %6 : vector<16x256xf32>
    %8 = arith.truncf %7 : vector<16x256xf32> to vector<16x256xbf16>
    %c0_6 = arith.constant 0 : index
    %c0_7 = arith.constant 0 : index
    %9 = vector.load %arg4[%c0_6, %c0_7] : memref<256x128xbf16, #tpu.memory_space<vmem>>, vector<256x128xbf16>
    %cst_8 = arith.constant dense<0.000000e+00> : vector<16x128xf32>
    %10 = tpu.matmul %8, %9, %cst_8 {dimension_numbers = #tpu.dot_dimension_numbers<[1], [0], [0], [1], [0, 0, 1, 1], [], []>} : vector<16x256xbf16>, vector<256x128xbf16>, vector<16x128xf32> -> vector<16x128xf32>
    %c0_9 = arith.constant 0 : index
    %c0_10 = arith.constant 0 : index
    %11 = vector.load %arg5[%c0_9, %c0_10] : memref<1x128xf32, #tpu.memory_space<vmem>>, vector<1x128xf32>
    %12 = vector.broadcast %11 : vector<1x128xf32> to vector<16x128xf32>
    %13 = arith.addf %10, %12 : vector<16x128xf32>
    %cst_11 = arith.constant dense<0xFF800000> : vector<16xf32>
    %14 = vector.multi_reduction <maximumf>, %13, %cst_11 [1] : vector<16x128xf32> to vector<16xf32>
    %15 = vector.shape_cast %14 : vector<16xf32> to vector<16x1xf32>
    %16 = vector.broadcast %15 : vector<16x1xf32> to vector<16x128xf32>
    %17 = arith.subf %13, %16 : vector<16x128xf32>
    %18 = math.exp %17 : vector<16x128xf32>
    %cst_12 = arith.constant dense<0.000000e+00> : vector<16xf32>
    %19 = vector.multi_reduction <add>, %18, %cst_12 [1] : vector<16x128xf32> to vector<16xf32>
    %20 = vector.shape_cast %19 : vector<16xf32> to vector<16x1xf32>
    %21 = vector.broadcast %20 : vector<16x1xf32> to vector<16x128xf32>
    %22 = arith.divf %18, %21 : vector<16x128xf32>
    %c0_13 = arith.constant 0 : index
    %c0_14 = arith.constant 0 : index
    %23 = vector.load %arg6[%c0_13, %c0_14] : memref<16x128xf32, #tpu.memory_space<vmem>>, vector<16x128xf32>
    tpu.vector_store %arg6[%c0_13, %c0_14], %22 {strides = array<i32>} : memref<16x128xf32, #tpu.memory_space<vmem>>, vector<16x128xf32>,
    return
  }
  func.func @transform_0(%arg0: i32) -> (i32, i32) {
    %c0_i32 = arith.constant 0 : i32
    %c0_i32_0 = arith.constant 0 : i32
    return %arg0, %c0_i32 : i32, i32
  }
  func.func @transform_1(%arg0: i32) -> (i32, i32) {
    %c0_i32 = arith.constant 0 : i32
    %c0_i32_0 = arith.constant 0 : i32
    %c0_i32_1 = arith.constant 0 : i32
    return %c0_i32, %c0_i32_0 : i32, i32
  }
  func.func @transform_2(%arg0: i32) -> (i32, i32) {
    %c0_i32 = arith.constant 0 : i32
    %c0_i32_0 = arith.constant 0 : i32
    %c0_i32_1 = arith.constant 0 : i32
    return %c0_i32, %c0_i32_0 : i32, i32
  }
  func.func @transform_3(%arg0: i32) -> (i32, i32) {
    %c0_i32 = arith.constant 0 : i32
    %c0_i32_0 = arith.constant 0 : i32
    %c0_i32_1 = arith.constant 0 : i32
    return %c0_i32, %c0_i32_0 : i32, i32
  }
  func.func @transform_4(%arg0: i32) -> (i32, i32) {
    %c0_i32 = arith.constant 0 : i32
    %c0_i32_0 = arith.constant 0 : i32
    %c0_i32_1 = arith.constant 0 : i32
    return %c0_i32, %c0_i32_0 : i32, i32
  }
  func.func @transform_5(%arg0: i32) -> (i32, i32) {
    %c0_i32 = arith.constant 0 : i32
    %c0_i32_0 = arith.constant 0 : i32
    return %arg0, %c0_i32 : i32, i32
  }
}

module attributes {stable_mosaic.version = 11 : i64} {
  func.func @classifier_kernel(%arg0: i32, %arg1: memref<16x1024xbf16, #tpu.memory_space<vmem>>, %arg2: memref<1024x256xbf16, #tpu.memory_space<vmem>>, %arg3: memref<1x256xf32, #tpu.memory_space<vmem>>, %arg4: memref<256x128xbf16, #tpu.memory_space<vmem>>, %arg5: memref<1x128xf32, #tpu.memory_space<vmem>>, %arg6: memref<16x128xf32, #tpu.memory_space<vmem>>) attributes {dimension_semantics = [#tpu.dimension_semantics<parallel>], iteration_bounds = array<i64: 1>, scalar_prefetch = 0 : i64, scratch_operands = 0 : i64, tpu.core_type = #tpu.core_type<tc>, window_params = [{transform_indices = @transform_0, window_bounds = array<i64: 16, 1024>}, {pipeline_mode = #tpu.pipeline_mode<synchronous>, transform_indices = @transform_1, window_bounds = array<i64: 1024, 256>}, {pipeline_mode = #tpu.pipeline_mode<synchronous>, transform_indices = @transform_2, window_bounds = array<i64: 1, 256>}, {pipeline_mode = #tpu.pipeline_mode<synchronous>, transform_indices = @transform_3, window_bounds = array<i64: 256, 128>}, {pipeline_mode = #tpu.pipeline_mode<synchronous>, transform_indices = @transform_4, window_bounds = array<i64: 1, 128>}, {transform_indices = @transform_5, window_bounds = array<i64: 16, 128>}]} {
    %c0 = arith.constant 0 : index
    %c0_0 = arith.constant 0 : index
    %0 = vector.load %arg1[%c0, %c0_0] : memref<16x1024xbf16, #tpu.memory_space<vmem>>, vector<16x1024xbf16>
    %c0_1 = arith.constant 0 : index
    %c0_2 = arith.constant 0 : index
    %1 = vector.load %arg2[%c0_1, %c0_2] : memref<1024x256xbf16, #tpu.memory_space<vmem>>, vector<1024x256xbf16>
    %cst = arith.constant dense<0.000000e+00> : vector<16x256xf32>
    %2 = tpu.matmul %0, %1, %cst {dimension_numbers = #tpu.dot_dimension_numbers<[1], [0], [0], [1], [0, 0, 1, 1], [], []>} : vector<16x1024xbf16>, vector<1024x256xbf16>, vector<16x256xf32> -> vector<16x256xf32>
    %c0_3 = arith.constant 0 : index
    %c0_4 = arith.constant 0 : index
    %3 = vector.load %arg3[%c0_3, %c0_4] : memref<1x256xf32, #tpu.memory_space<vmem>>, vector<1x256xf32>
    %4 = vector.broadcast %3 : vector<1x256xf32> to vector<16x256xf32>
    %5 = arith.addf %2, %4 : vector<16x256xf32>
    %cst_5 = arith.constant 0.000000e+00 : f32
    %6 = vector.broadcast %cst_5 : f32 to vector<16x256xf32>
    %7 = arith.maximumf %5, %6 : vector<16x256xf32>
    %8 = arith.truncf %7 : vector<16x256xf32> to vector<16x256xbf16>
    %c0_6 = arith.constant 0 : index
    %c0_7 = arith.constant 0 : index
    %9 = vector.load %arg4[%c0_6, %c0_7] : memref<256x128xbf16, #tpu.memory_space<vmem>>, vector<256x128xbf16>
    %cst_8 = arith.constant dense<0.000000e+00> : vector<16x128xf32>
    %10 = tpu.matmul %8, %9, %cst_8 {dimension_numbers = #tpu.dot_dimension_numbers<[1], [0], [0], [1], [0, 0, 1, 1], [], []>} : vector<16x256xbf16>, vector<256x128xbf16>, vector<16x128xf32> -> vector<16x128xf32>
    %c0_9 = arith.constant 0 : index
    %c0_10 = arith.constant 0 : index
    %11 = vector.load %arg5[%c0_9, %c0_10] : memref<1x128xf32, #tpu.memory_space<vmem>>, vector<1x128xf32>
    %12 = vector.broadcast %11 : vector<1x128xf32> to vector<16x128xf32>
    %13 = arith.addf %10, %12 : vector<16x128xf32>
    %cst_11 = arith.constant dense<0xFF800000> : vector<16xf32>
    %14 = vector.multi_reduction <maximumf>, %13, %cst_11 [1] : vector<16x128xf32> to vector<16xf32>
    %15 = vector.shape_cast %14 : vector<16xf32> to vector<16x1xf32>
    %16 = vector.broadcast %15 : vector<16x1xf32> to vector<16x128xf32>
    %17 = arith.subf %13, %16 : vector<16x128xf32>
    %18 = math.exp %17 : vector<16x128xf32>
    %cst_12 = arith.constant dense<0.000000e+00> : vector<16xf32>
    %19 = vector.multi_reduction <add>, %18, %cst_12 [1] : vector<16x128xf32> to vector<16xf32>
    %20 = vector.shape_cast %19 : vector<16xf32> to vector<16x1xf32>
    %21 = vector.broadcast %20 : vector<16x1xf32> to vector<16x128xf32>
    %22 = arith.divf %18, %21 : vector<16x128xf32>
    %c0_13 = arith.constant 0 : index
    %c0_14 = arith.constant 0 : index
    %23 = vector.load %arg6[%c0_13, %c0_14] : memref<16x128xf32, #tpu.memory_space<vmem>>, vector<16x128xf32>
    tpu.vector_store %arg6[%c0_13, %c0_14], %22 {strides = array<i32>} : memref<16x128xf32, #tpu.memory_space<vmem>>, vector<16x128xf32>,
    return
  }
  func.func @transform_0(%arg0: i32) -> (i32, i32) {
    %c0_i32 = arith.constant 0 : i32
    %c0_i32_0 = arith.constant 0 : i32
    return %arg0, %c0_i32 : i32, i32
  }
  func.func @transform_1(%arg0: i32) -> (i32, i32) {
    %c0_i32 = arith.constant 0 : i32
    %c0_i32_0 = arith.constant 0 : i32
    %c0_i32_1 = arith.constant 0 : i32
    return %c0_i32, %c0_i32_0 : i32, i32
  }
  func.func @transform_2(%arg0: i32) -> (i32, i32) {
    %c0_i32 = arith.constant 0 : i32
    %c0_i32_0 = arith.constant 0 : i32
    %c0_i32_1 = arith.constant 0 : i32
    return %c0_i32, %c0_i32_0 : i32, i32
  }
  func.func @transform_3(%arg0: i32) -> (i32, i32) {
    %c0_i32 = arith.constant 0 : i32
    %c0_i32_0 = arith.constant 0 : i32
    %c0_i32_1 = arith.constant 0 : i32
    return %c0_i32, %c0_i32_0 : i32, i32
  }
  func.func @transform_4(%arg0: i32) -> (i32, i32) {
    %c0_i32 = arith.constant 0 : i32
    %c0_i32_0 = arith.constant 0 : i32
    %c0_i32_1 = arith.constant 0 : i32
    return %c0_i32, %c0_i32_0 : i32, i32
  }
  func.func @transform_5(%arg0: i32) -> (i32, i32) {
    %c0_i32 = arith.constant 0 : i32
    %c0_i32_0 = arith.constant 0 : i32
    return %arg0, %c0_i32 : i32, i32
  }
}

</mosaic_0001>

<bundles_post_ra>
// kernel: tpu_custom_call.1
= control target key start
LH: loop header
LB: loop body
LE: loop exit
PB: predicated region body
PF: predicated region fallthrough
CT: control target
= control target key end

     0   :  { %10 = vsyncpa [#allocation3], 0  ;;  %s1910_s0 = inlined_call_operand.hbm [shape: bf16[16,1024], index: 0, kind: input, shape index: {}]   ;;  %s1911_s1 = inlined_call_operand.hbm [shape: bf16[1024,256], index: 1, kind: input, shape index: {}]   ;;  %s1912_s2 = inlined_call_operand.vmem [shape: f32[1,256], index: 2, kind: input, shape index: {}]   ;;  %s1913_s3 = inlined_call_operand.hbm [shape: bf16[256,128], index: 3, kind: input, shape index: {}]   ;;  %s1914_s4 = inlined_call_operand.vmem [shape: f32[1,128], index: 4, kind: input, shape index: {}]   ;;  %s1915_s5 = inlined_call_operand.hbm [shape: f32[16,128], index: 5, kind: output, shape index: {}]  }
   0x1   :  { %11 = vsyncpa [#allocation6], 0 }
   0x2   :  { %12 = vsyncpa [#allocation4], 0  ;;  %s1794_s18 = smov [#allocation5]   ;;  %s1700_s22 = scalar_lea.hbm %s1911_s1, 16384 }
   0x3   :  { %s30_s19 = sshll.u32 %s1794_s18, 4  ;;  %p1701_p0 = scmp.ne.s32.totalorder %s1911_s1, %s1700_s22  ;;  %s31_s19 = int_to_ptr.vmem [resolvable:$true] %s30_s19 }
   0x4   :  { %p1704_p1 = scmp.lt.u32.totalorder %s1700_s22, %s1911_s1 }
   0x6   :  { %p1706_p2 = pnand %p1704_p1, %p1701_p0 }
   0x8   :  { %1709 = shalt.err (!%p1706_p2)
}
   0x9   :  { %s1710_s27 = scalar_lea.vmem %s31_s19, 16384  ;;  %p1715_p4 = scmp.lt.s32.totalorder %s31_s19, %s31_s19 }
   0xa   :  { %p1711_p3 = scmp.ne.s32.totalorder %s31_s19, %s1710_s27  ;;  %p1716_p5 = scmp.lt.s32.totalorder %s1710_s27, %s1710_s27 }
   0xc   :  { %p1717_p6 = por %p1716_p5, %p1715_p4 }
   0xe   :  { %p1718_p7 = pnand %p1717_p6, %p1711_p3 }
  0x10   :  { %1721 = shalt.err (!%p1718_p7)
}
  0x11   :  { %s1795_s28 = smov 128   ;;  %s1796_s29 = smov 8  }
  0x12   :  { %36 = dma.hbm_to_vmem [thread:$0]  %s1911_s1, 16384, %s31_s19, [#allocation6], %s1795_s28, %s1795_s28, %s1796_s29  }
  0x13   :  { %s1797_s7 = smov [#allocation2]   ;;  %s1722_s11 = scalar_lea.hbm %s1910_s0, 1024 }
  0x14   :  { %s18_s8 = sshll.u32 %s1797_s7, 4  ;;  %p1723_p8 = scmp.ne.s32.totalorder %s1910_s0, %s1722_s11  ;;  %s19_s8 = int_to_ptr.vmem [resolvable:$true] %s18_s8 }
  0x15   :  { %p1726_p9 = scmp.lt.u32.totalorder %s1722_s11, %s1910_s0 }
  0x17   :  { %p1728_p10 = pnand %p1726_p9, %p1723_p8 }
  0x19   :  { %1731 = shalt.err (!%p1728_p10)
}
  0x1a   :  { %s1732_s16 = scalar_lea.vmem %s19_s8, 1024  ;;  %p1737_p12 = scmp.lt.s32.totalorder %s19_s8, %s19_s8 }
  0x1b   :  { %p1733_p11 = scmp.ne.s32.totalorder %s19_s8, %s1732_s16  ;;  %p1738_p13 = scmp.lt.s32.totalorder %s1732_s16, %s1732_s16 }
  0x1d   :  { %p1739_p0 = por %p1738_p13, %p1737_p12 }
  0x1f   :  { %p1740_p1 = pnand %p1739_p0, %p1733_p11 }
  0x21   :  { %1743 = shalt.err (!%p1740_p1)
}
  0x22   :  { %s1798_s1 = smov 512   ;;  %s1799_s17 = smov 32  }
  0x23   :  { %24 = dma.hbm_to_vmem [thread:$0]  %s1910_s0, 1024, %s19_s8, [#allocation3], %s1798_s1, %s1798_s1, %s1799_s17  }
  0x24   :  { %s1800_s20 = smov [#allocation7]   ;;  %s1744_s24 = scalar_lea.hbm %s1913_s3, 2048 }
  0x25   :  { %s44_s21 = sshll.u32 %s1800_s20, 4  ;;  %p1745_p2 = scmp.ne.s32.totalorder %s1913_s3, %s1744_s24  ;;  %s45_s21 = int_to_ptr.vmem [resolvable:$true] %s44_s21 }
  0x26   :  { %p1748_p3 = scmp.lt.u32.totalorder %s1744_s24, %s1913_s3 }
  0x28   :  { %p1750_p4 = pnand %p1748_p3, %p1745_p2 }
  0x2a   :  { %1753 = shalt.err (!%p1750_p4)
}
  0x2b   :  { %s1754_s6 = scalar_lea.vmem %s45_s21, 2048  ;;  %p1759_p6 = scmp.lt.s32.totalorder %s45_s21, %s45_s21 }
  0x2c   :  { %p1755_p5 = scmp.ne.s32.totalorder %s45_s21, %s1754_s6  ;;  %p1760_p7 = scmp.lt.s32.totalorder %s1754_s6, %s1754_s6 }
  0x2e   :  { %p1761_p8 = por %p1760_p7, %p1759_p6 }
  0x30   :  { %p1762_p9 = pnand %p1761_p8, %p1755_p5 }
  0x32   :  { %1765 = shalt.err (!%p1762_p9)
}
  0x33   :  { %s1801_s0 = smov 64   ;;  %s1802_s7 = smov 4  }
  0x34   :  { %50 = dma.hbm_to_vmem [thread:$0]  %s1913_s3, 2048, %s45_s21, [#allocation6], %s1801_s0, %s1801_s0, %s1802_s7  }
  0x35   :  { %1788 = dma.done.wait [#allocation3], 1024  }
  0x36   :  { %1789 = vsyncadd [#allocation3], 4294966272 }
  0x37   :  { %1790 = dma.done.wait [#allocation6], 18432  }
  0x38   :  { %1791 = vsyncadd [#allocation6], 4294948864  ;;  %v1484_v0 = vld [vmem:[#allocation5 + $0x4] ss:$8 sps:$4 sm:$0xff]   ;;  %v1488_v2 = vld [vmem:[#allocation5] ss:$8 sps:$4 sm:$0xff]  }
  0x39   :  { %v1486_v1 = vld [vmem:[#allocation5 + $0x204] ss:$8 sps:$4 sm:$0xff]   ;;  %891 = vmatprep.subr.bf16.mxu1 %v1484_v0  ;;  %v1489_v3 = vld [vmem:[#allocation5 + $0x200] ss:$8 sps:$4 sm:$0xff]   ;;  %v1490_v4 = vld [vmem:[#allocation5 + $0x14] ss:$8 sps:$4 sm:$0xff]  }
  0x3a   :  { %977 = vmatprep.subr.bf16.mxu0 %v1486_v1  ;;  %892 = vmatpush1.bf16.msra.mxu1 %v1488_v2  ;;  %v1492_v5 = vld [vmem:[#allocation5 + $0x214] ss:$8 sps:$4 sm:$0xff]   ;;  %v1494_v6 = vld [vmem:[#allocation5 + $0x10] ss:$8 sps:$4 sm:$0xff]   ;;  %v1496_v8 = vld [vmem:[#allocation5 + $0x24] ss:$8 sps:$4 sm:$0xff]  }
  0x3b   :  { %978 = vmatpush1.bf16.msra.mxu0 %v1489_v3  ;;  %893 = vmatprep.subr.bf16.mxu1 %v1490_v4  ;;  %v1495_v7 = vld [vmem:[#allocation5 + $0x210] ss:$8 sps:$4 sm:$0xff]   ;;  %v1498_v9 = vld [vmem:[#allocation5 + $0x224] ss:$8 sps:$4 sm:$0xff]   ;;  %v1500_v10 = vld [vmem:[#allocation5 + $0x20] ss:$8 sps:$4 sm:$0xff]  }
  0x3c   :  { %979 = vmatprep.subr.bf16.mxu0 %v1492_v5  ;;  %v1501_v11 = vld [vmem:[#allocation5 + $0x220] ss:$8 sps:$4 sm:$0xff]   ;;  %v1502_v12 = vld [vmem:[#allocation5 + $0x34] ss:$8 sps:$4 sm:$0xff]   ;;  %v1506_v14 = vld [vmem:[#allocation5 + $0x30] ss:$8 sps:$4 sm:$0xff]  }
  0x3d   :  { %v1504_v13 = vld [vmem:[#allocation5 + $0x234] ss:$8 sps:$4 sm:$0xff]   ;;  %v1507_v15 = vld [vmem:[#allocation5 + $0x230] ss:$8 sps:$4 sm:$0xff]   ;;  %v1508_v16 = vld [vmem:[#allocation5 + $0x44] ss:$8 sps:$4 sm:$0xff]  }
  0x3e   :  { %894 = vmatpush1.bf16.msra.mxu1 %v1494_v6  ;;  %v1510_v17 = vld [vmem:[#allocation5 + $0x244] ss:$8 sps:$4 sm:$0xff]   ;;  %v1512_v18 = vld [vmem:[#allocation5 + $0x40] ss:$8 sps:$4 sm:$0xff]   ;;  %v1514_v20 = vld [vmem:[#allocation5 + $0x54] ss:$8 sps:$4 sm:$0xff]  }
  0x3f   :  { %980 = vmatpush1.bf16.msra.mxu0 %v1495_v7  ;;  %895 = vmatprep.subr.bf16.mxu1 %v1496_v8  ;;  %v1513_v19 = vld [vmem:[#allocation5 + $0x240] ss:$8 sps:$4 sm:$0xff]   ;;  %v1516_v21 = vld [vmem:[#allocation5 + $0x254] ss:$8 sps:$4 sm:$0xff]   ;;  %v1518_v22 = vld [vmem:[#allocation5 + $0x50] ss:$8 sps:$4 sm:$0xff]  }
  0x40   :  { %981 = vmatprep.subr.bf16.mxu0 %v1498_v9  ;;  %v1519_v23 = vld [vmem:[#allocation5 + $0x250] ss:$8 sps:$4 sm:$0xff]   ;;  %v1520_v24 = vld [vmem:[#allocation5 + $0x64] ss:$8 sps:$4 sm:$0xff]   ;;  %v1524_v26 = vld [vmem:[#allocation5 + $0x60] ss:$8 sps:$4 sm:$0xff]  }
  0x41   :  { %v1522_v25 = vld [vmem:[#allocation5 + $0x264] ss:$8 sps:$4 sm:$0xff]   ;;  %v1525_v27 = vld [vmem:[#allocation5 + $0x260] ss:$8 sps:$4 sm:$0xff]   ;;  %v1526_v28 = vld [vmem:[#allocation5 + $0x74] ss:$8 sps:$4 sm:$0xff]  }
  0x42   :  { %896 = vmatpush1.bf16.msra.mxu1 %v1500_v10  ;;  %v1528_v29 = vld [vmem:[#allocation5 + $0x274] ss:$8 sps:$4 sm:$0xff]   ;;  %v1530_v30 = vld [vmem:[#allocation5 + $0x70] ss:$8 sps:$4 sm:$0xff]   ;;  %v1532_v32 = vld [vmem:[#allocation5 + $0x84] ss:$8 sps:$4 sm:$0xff]  }
  0x43   :  { %982 = vmatpush1.bf16.msra.mxu0 %v1501_v11  ;;  %897 = vmatprep.subr.bf16.mxu1 %v1502_v12  ;;  %v1531_v31 = vld [vmem:[#allocation5 + $0x270] ss:$8 sps:$4 sm:$0xff]   ;;  %v1534_v33 = vld [vmem:[#allocation5 + $0x284] ss:$8 sps:$4 sm:$0xff]   ;;  %v1536_v34 = vld [vmem:[#allocation5 + $0x80] ss:$8 sps:$4 sm:$0xff]  }
  0x44   :  { %983 = vmatprep.subr.bf16.mxu0 %v1504_v13  ;;  %v1537_v35 = vld [vmem:[#allocation5 + $0x280] ss:$8 sps:$4 sm:$0xff]   ;;  %v1538_v36 = vld [vmem:[#allocation5 + $0x94] ss:$8 sps:$4 sm:$0xff]   ;;  %v1542_v38 = vld [vmem:[#allocation5 + $0x90] ss:$8 sps:$4 sm:$0xff]  }
  0x45   :  { %v1540_v37 = vld [vmem:[#allocation5 + $0x294] ss:$8 sps:$4 sm:$0xff]   ;;  %v1543_v39 = vld [vmem:[#allocation5 + $0x290] ss:$8 sps:$4 sm:$0xff]   ;;  %v1544_v40 = vld [vmem:[#allocation5 + $0xa4] ss:$8 sps:$4 sm:$0xff]  }
  0x46   :  { %898 = vmatpush1.bf16.msra.mxu1 %v1506_v14  ;;  %v1546_v41 = vld [vmem:[#allocation5 + $0x2a4] ss:$8 sps:$4 sm:$0xff]   ;;  %v1548_v42 = vld [vmem:[#allocation5 + $0xa0] ss:$8 sps:$4 sm:$0xff]   ;;  %v1550_v44 = vld [vmem:[#allocation5 + $0xb4] ss:$8 sps:$4 sm:$0xff]  }
  0x47   :  { %984 = vmatpush1.bf16.msra.mxu0 %v1507_v15  ;;  %899 = vmatprep.subr.bf16.mxu1 %v1508_v16  ;;  %v1549_v43 = vld [vmem:[#allocation5 + $0x2a0] ss:$8 sps:$4 sm:$0xff]   ;;  %v1552_v45 = vld [vmem:[#allocation5 + $0x2b4] ss:$8 sps:$4 sm:$0xff]   ;;  %v1554_v46 = vld [vmem:[#allocation5 + $0xb0] ss:$8 sps:$4 sm:$0xff]  }
  0x48   :  { %985 = vmatprep.subr.bf16.mxu0 %v1510_v17  ;;  %v1555_v47 = vld [vmem:[#allocation5 + $0x2b0] ss:$8 sps:$4 sm:$0xff]   ;;  %v63_v48 = vld [vmem:[#allocation2] sm:$0xff]  ;;  %v1562_v58 = vld [vmem:[#allocation5 + $0xd4] ss:$8 sps:$4 sm:$0xff]  }
  0x49   :  { %v67_v49 = vld [vmem:[#allocation2 + $0x20] sm:$0xff]  ;;  %v65_v53 = vld [vmem:[#allocation2 + $0x10] sm:$0xff] }
  0x4a   :  { %900 = vmatpush1.bf16.msra.mxu1 %v1512_v18  ;;  %v1556_v50 = vld [vmem:[#allocation5 + $0xc4] ss:$8 sps:$4 sm:$0xff]   ;;  %v1284_v52 = vcombine.high %v63_v48, %v67_v49  ;;  %v69_v54 = vld [vmem:[#allocation2 + $0x30] sm:$0xff]  ;;  %v1560_v56 = vld [vmem:[#allocation5 + $0xc0] ss:$8 sps:$4 sm:$0xff]   ;;  %v1283_v8 = vcombine.low %v63_v48, %v67_v49 }
  0x4b   :  { %986 = vmatpush1.bf16.msra.mxu0 %v1513_v19  ;;  %901 = vmatprep.subr.bf16.mxu1 %v1514_v20  ;;  %v1558_v51 = vld [vmem:[#allocation5 + $0x2c4] ss:$8 sps:$4 sm:$0xff]   ;;  %v1288_v55 = vcombine.high %v65_v53, %v69_v54  ;;  %v1561_v57 = vld [vmem:[#allocation5 + $0x2c0] ss:$8 sps:$4 sm:$0xff]   ;;  %v1564_v59 = vld [vmem:[#allocation5 + $0x2d4] ss:$8 sps:$4 sm:$0xff]   ;;  %v1287_v10 = vcombine.low %v65_v53, %v69_v54 }
  0x4c   :  { %987 = vmatprep.subr.bf16.mxu0 %v1516_v21  ;;  %923 = vmatprep.mubr.bf16.mxu1 %v1284_v52  ;;  %v1566_v60 = vld [vmem:[#allocation5 + $0xd0] ss:$8 sps:$4 sm:$0xff]   ;;  %v1568_v62 = vld [vmem:[#allocation5 + $0xe4] ss:$8 sps:$4 sm:$0xff]   ;;  %v1572_v0 = vld [vmem:[#allocation5 + $0xe0] ss:$8 sps:$4 sm:$0xff]  }
  0x4d   :  { %1009 = vmatprep.mubr.bf16.mxu0 %v1288_v55  ;;  %v1567_v61 = vld [vmem:[#allocation5 + $0x2d0] ss:$8 sps:$4 sm:$0xff]   ;;  %v1570_v63 = vld [vmem:[#allocation5 + $0x2e4] ss:$8 sps:$4 sm:$0xff]   ;;  %v1573_v1 = vld [vmem:[#allocation5 + $0x2e0] ss:$8 sps:$4 sm:$0xff]  }
  0x4e   :  { %902 = vmatpush1.bf16.msra.mxu1 %v1518_v22  ;;  %v1574_v2 = vld [vmem:[#allocation5 + $0xf4] ss:$8 sps:$4 sm:$0xff]   ;;  %v1578_v4 = vld [vmem:[#allocation5 + $0xf0] ss:$8 sps:$4 sm:$0xff]   ;;  %v1582_v6 = vld [vmem:[#allocation5 + $0x104] ss:$8 sps:$4 sm:$0xff]  }
  0x4f   :  { %988 = vmatpush1.bf16.msra.mxu0 %v1519_v23  ;;  %903 = vmatprep.subr.bf16.mxu1 %v1520_v24  ;;  %v1576_v3 = vld [vmem:[#allocation5 + $0x2f4] ss:$8 sps:$4 sm:$0xff]   ;;  %v1579_v5 = vld [vmem:[#allocation5 + $0x2f0] ss:$8 sps:$4 sm:$0xff]   ;;  %v1585_v7 = vld [vmem:[#allocation5 + $0x304] ss:$8 sps:$4 sm:$0xff]  }
  0x50   :  { %989 = vmatprep.subr.bf16.mxu0 %v1522_v25  ;;  %v1580_v9 = vld [vmem:[#allocation5 + $0x100] ss:$8 sps:$4 sm:$0xff]   ;;  %v1588_v12 = vld [vmem:[#allocation5 + $0x114] ss:$8 sps:$4 sm:$0xff]   ;;  %v1586_v14 = vld [vmem:[#allocation5 + $0x110] ss:$8 sps:$4 sm:$0xff]  }
  0x51   :  { %v1583_v11 = vld [vmem:[#allocation5 + $0x300] ss:$8 sps:$4 sm:$0xff]   ;;  %v1591_v13 = vld [vmem:[#allocation5 + $0x314] ss:$8 sps:$4 sm:$0xff]   ;;  %v1589_v15 = vld [vmem:[#allocation5 + $0x310] ss:$8 sps:$4 sm:$0xff]  }
  0x52   :  { %904 = vmatpush1.bf16.msra.mxu1 %v1524_v26  ;;  %v1594_v16 = vld [vmem:[#allocation5 + $0x124] ss:$8 sps:$4 sm:$0xff]   ;;  %v1592_v18 = vld [vmem:[#allocation5 + $0x120] ss:$8 sps:$4 sm:$0xff]   ;;  %v1600_v20 = vld [vmem:[#allocation5 + $0x134] ss:$8 sps:$4 sm:$0xff]  }
  0x53   :  { %990 = vmatpush1.bf16.msra.mxu0 %v1525_v27  ;;  %905 = vmatprep.subr.bf16.mxu1 %v1526_v28  ;;  %v1597_v17 = vld [vmem:[#allocation5 + $0x324] ss:$8 sps:$4 sm:$0xff]   ;;  %v1595_v19 = vld [vmem:[#allocation5 + $0x320] ss:$8 sps:$4 sm:$0xff]   ;;  %v1603_v21 = vld [vmem:[#allocation5 + $0x334] ss:$8 sps:$4 sm:$0xff]  }
  0x54   :  { %991 = vmatprep.subr.bf16.mxu0 %v1528_v29  ;;  %v1598_v22 = vld [vmem:[#allocation5 + $0x130] ss:$8 sps:$4 sm:$0xff]   ;;  %v1606_v24 = vld [vmem:[#allocation5 + $0x144] ss:$8 sps:$4 sm:$0xff]   ;;  %v1604_v26 = vld [vmem:[#allocation5 + $0x140] ss:$8 sps:$4 sm:$0xff]  }
  0x55   :  { %v1601_v23 = vld [vmem:[#allocation5 + $0x330] ss:$8 sps:$4 sm:$0xff]   ;;  %v1609_v25 = vld [vmem:[#allocation5 + $0x344] ss:$8 sps:$4 sm:$0xff]   ;;  %v1607_v27 = vld [vmem:[#allocation5 + $0x340] ss:$8 sps:$4 sm:$0xff]  }
  0x56   :  { %906 = vmatpush1.bf16.msra.mxu1 %v1530_v30  ;;  %v1612_v28 = vld [vmem:[#allocation5 + $0x154] ss:$8 sps:$4 sm:$0xff]   ;;  %v1610_v30 = vld [vmem:[#allocation5 + $0x150] ss:$8 sps:$4 sm:$0xff]   ;;  %v1628_v48 = vld [vmem:[#allocation5 + $0x180] ss:$8 sps:$4 sm:$0xff]  }
  0x57   :  { %992 = vmatpush1.bf16.msra.mxu0 %v1531_v31  ;;  %907 = vmatprep.subr.bf16.mxu1 %v1532_v32  ;;  %v1615_v29 = vld [vmem:[#allocation5 + $0x354] ss:$8 sps:$4 sm:$0xff]   ;;  %v1613_v31 = vld [vmem:[#allocation5 + $0x350] ss:$8 sps:$4 sm:$0xff]   ;;  %v1618_v32 = vld [vmem:[#allocation5 + $0x164] ss:$8 sps:$4 sm:$0xff]  }
  0x58   :  { %993 = vmatprep.subr.bf16.mxu0 %v1534_v33  ;;  %v1621_v33 = vld [vmem:[#allocation5 + $0x364] ss:$8 sps:$4 sm:$0xff]   ;;  %v1631_v49 = vld [vmem:[#allocation5 + $0x380] ss:$8 sps:$4 sm:$0xff]   ;;  %v1634_v52 = vld [vmem:[#allocation5 + $0x190] ss:$8 sps:$4 sm:$0xff]  }
  0x59   :  { %v1637_v53 = vld [vmem:[#allocation5 + $0x390] ss:$8 sps:$4 sm:$0xff]   ;;  %v1642_v54 = vld [vmem:[#allocation5 + $0x1a4] ss:$8 sps:$4 sm:$0xff]  }
  0x5a   :  { %908 = vmatpush1.bf16.msra.mxu1 %v1536_v34  ;;  %v1616_v34 = vld [vmem:[#allocation5 + $0x160] ss:$8 sps:$4 sm:$0xff]   ;;  %v1645_v55 = vld [vmem:[#allocation5 + $0x3a4] ss:$8 sps:$4 sm:$0xff]  }
  0x5b   :  { %994 = vmatpush1.bf16.msra.mxu0 %v1537_v35  ;;  %909 = vmatprep.subr.bf16.mxu1 %v1538_v36  ;;  %v1619_v35 = vld [vmem:[#allocation5 + $0x360] ss:$8 sps:$4 sm:$0xff]  }
  0x5c   :  { %995 = vmatprep.subr.bf16.mxu0 %v1540_v37  ;;  %v1873_v36 = vld [vmem:[#allocation2 + $0x8] sm:$0xff] }
  0x5d   :  { %v1875_v37 = vld [vmem:[#allocation2 + $0x28] sm:$0xff] }
  0x5e   :  { %910 = vmatpush1.bf16.msra.mxu1 %v1542_v38  ;;  %v1877_v38 = vld [vmem:[#allocation2 + $0x18] sm:$0xff] }
  0x5f   :  { %996 = vmatpush1.bf16.msra.mxu0 %v1543_v39  ;;  %911 = vmatprep.subr.bf16.mxu1 %v1544_v40  ;;  %v1879_v39 = vld [vmem:[#allocation2 + $0x38] sm:$0xff] }
  0x60   :  { %997 = vmatprep.subr.bf16.mxu0 %v1546_v41  ;;  %v1624_v40 = vld [vmem:[#allocation5 + $0x174] ss:$8 sps:$4 sm:$0xff]   ;;  %v1286_v41 = vcombine.high %v1873_v36, %v1875_v37 }
  0x62   :  { %912 = vmatpush1.bf16.msra.mxu1 %v1548_v42  ;;  %v1627_v42 = vld [vmem:[#allocation5 + $0x374] ss:$8 sps:$4 sm:$0xff]  }
  0x63   :  { %998 = vmatpush1.bf16.msra.mxu0 %v1549_v43  ;;  %913 = vmatprep.subr.bf16.mxu1 %v1550_v44  ;;  %v1290_v43 = vcombine.high %v1877_v38, %v1879_v39  ;;  %v1622_v44 = vld [vmem:[#allocation5 + $0x170] ss:$8 sps:$4 sm:$0xff]  }
  0x64   :  { %999 = vmatprep.subr.bf16.mxu0 %v1552_v45  ;;  %v1625_v45 = vld [vmem:[#allocation5 + $0x370] ss:$8 sps:$4 sm:$0xff]  }
  0x66   :  { %914 = vmatpush1.bf16.msra.mxu1 %v1554_v46  ;;  %v1630_v46 = vld [vmem:[#allocation5 + $0x184] ss:$8 sps:$4 sm:$0xff]  }
  0x67   :  { %1000 = vmatpush1.bf16.msra.mxu0 %v1555_v47  ;;  %915 = vmatprep.subr.bf16.mxu1 %v1556_v50  ;;  %v1633_v47 = vld [vmem:[#allocation5 + $0x384] ss:$8 sps:$4 sm:$0xff]   ;;  %v1636_v50 = vld [vmem:[#allocation5 + $0x194] ss:$8 sps:$4 sm:$0xff]  }
  0x68   :  { %1001 = vmatprep.subr.bf16.mxu0 %v1558_v51  ;;  %v1639_v51 = vld [vmem:[#allocation5 + $0x394] ss:$8 sps:$4 sm:$0xff]  }
  0x6a   :  { %916 = vmatpush1.bf16.msra.mxu1 %v1560_v56  ;;  %v1640_v56 = vld [vmem:[#allocation5 + $0x1a0] ss:$8 sps:$4 sm:$0xff]  }
  0x6b   :  { %1002 = vmatpush1.bf16.msra.mxu0 %v1561_v57  ;;  %917 = vmatprep.subr.bf16.mxu1 %v1562_v58  ;;  %v1643_v57 = vld [vmem:[#allocation5 + $0x3a0] ss:$8 sps:$4 sm:$0xff]   ;;  %v1648_v58 = vld [vmem:[#allocation5 + $0x1b4] ss:$8 sps:$4 sm:$0xff]  }
  0x6c   :  { %1003 = vmatprep.subr.bf16.mxu0 %v1564_v59  ;;  %v1651_v59 = vld [vmem:[#allocation5 + $0x3b4] ss:$8 sps:$4 sm:$0xff]  }
  0x6e   :  { %918 = vmatpush1.bf16.msra.mxu1 %v1566_v60  ;;  %v1646_v60 = vld [vmem:[#allocation5 + $0x1b0] ss:$8 sps:$4 sm:$0xff]  }
  0x6f   :  { %1004 = vmatpush1.bf16.msra.mxu0 %v1567_v61  ;;  %919 = vmatprep.subr.bf16.mxu1 %v1568_v62  ;;  %v1649_v61 = vld [vmem:[#allocation5 + $0x3b0] ss:$8 sps:$4 sm:$0xff]   ;;  %v1654_v62 = vld [vmem:[#allocation5 + $0x1c4] ss:$8 sps:$4 sm:$0xff]  }
  0x70   :  { %1005 = vmatprep.subr.bf16.mxu0 %v1570_v63  ;;  %v1657_v63 = vld [vmem:[#allocation5 + $0x3c4] ss:$8 sps:$4 sm:$0xff]  }
  0x72   :  { %920 = vmatpush1.bf16.msra.mxu1 %v1572_v0  ;;  %v1652_v0 = vld [vmem:[#allocation5 + $0x1c0] ss:$8 sps:$4 sm:$0xff]  }
  0x73   :  { %1006 = vmatpush1.bf16.msra.mxu0 %v1573_v1  ;;  %921 = vmatprep.subr.bf16.mxu1 %v1574_v2  ;;  %v1655_v1 = vld [vmem:[#allocation5 + $0x3c0] ss:$8 sps:$4 sm:$0xff]   ;;  %v1660_v2 = vld [vmem:[#allocation5 + $0x1d4] ss:$8 sps:$4 sm:$0xff]  }
  0x74   :  { %1007 = vmatprep.subr.bf16.mxu0 %v1576_v3  ;;  %v1663_v3 = vld [vmem:[#allocation5 + $0x3d4] ss:$8 sps:$4 sm:$0xff]  }
  0x76   :  { %922 = vmatpush1.bf16.msra.mxu1 %v1578_v4  ;;  %v1658_v4 = vld [vmem:[#allocation5 + $0x1d0] ss:$8 sps:$4 sm:$0xff]  }
  0x77   :  { %1008 = vmatpush1.bf16.msra.mxu0 %v1579_v5  ;;  %934 = vmatprep.subr.bf16.mxu1 %v1582_v6  ;;  %v1661_v5 = vld [vmem:[#allocation5 + $0x3d0] ss:$8 sps:$4 sm:$0xff]   ;;  %v1666_v6 = vld [vmem:[#allocation5 + $0x1e4] ss:$8 sps:$4 sm:$0xff]  }
  0x78   :  { %1020 = vmatprep.subr.bf16.mxu0 %v1585_v7  ;;  %v1669_v7 = vld [vmem:[#allocation5 + $0x3e4] ss:$8 sps:$4 sm:$0xff]  }
  0x79   :  { %924 = vmatmul.mubr.bf16.vlgmr.msra.gmra.mrb[0].mxu1 %v1283_v8  ;;  %v1664_v8 = vld [vmem:[#allocation5 + $0x1e0] ss:$8 sps:$4 sm:$0xff]  }
  0x7a   :  { %1010 = vmatmul.mubr.bf16.vlgmr.msra.gmra.mrb[0].mxu0 %v1287_v10  ;;  %935 = vmatpush1.bf16.msra.mxu1 %v1580_v9  ;;  %v1667_v9 = vld [vmem:[#allocation5 + $0x3e0] ss:$8 sps:$4 sm:$0xff]   ;;  %v1672_v10 = vld [vmem:[#allocation5 + $0x1f4] ss:$8 sps:$4 sm:$0xff]  }
  0x7b   :  { %1021 = vmatpush1.bf16.msra.mxu0 %v1583_v11  ;;  %936 = vmatprep.subr.bf16.mxu1 %v1588_v12  ;;  %v1675_v11 = vld [vmem:[#allocation5 + $0x3f4] ss:$8 sps:$4 sm:$0xff]   ;;  %v1670_v12 = vld [vmem:[#allocation5 + $0x1f0] ss:$8 sps:$4 sm:$0xff]  }
  0x7c   :  { %1022 = vmatprep.subr.bf16.mxu0 %v1591_v13  ;;  %966 = vmatprep.mubr.bf16.mxu1 %v1286_v41  ;;  %v1673_v13 = vld [vmem:[#allocation5 + $0x3f0] ss:$8 sps:$4 sm:$0xff]  }
  0x7d   :  { %1052 = vmatprep.mubr.bf16.mxu0 %v1290_v43 }
  0x7e   :  { %937 = vmatpush1.bf16.msra.mxu1 %v1586_v14  ;;  %v1676_v14 = vld [vmem:[#allocation7 + $0x40] sm:$0xff]  }
  0x7f   :  { %1023 = vmatpush1.bf16.msra.mxu0 %v1589_v15  ;;  %938 = vmatprep.subr.bf16.mxu1 %v1594_v16  ;;  %v1285_v15 = vcombine.low %v1873_v36, %v1875_v37  ;;  %v1289_v16 = vcombine.low %v1877_v38, %v1879_v39 }
  0x80   :  { %1024 = vmatprep.subr.bf16.mxu0 %v1597_v17  ;;  %v1677_v17 = vld [vmem:[#allocation7] sm:$0xff]  }
  0x82   :  { %939 = vmatpush1.bf16.msra.mxu1 %v1592_v18  ;;  %v1678_v18 = vld [vmem:[#allocation7 + $0x48] sm:$0xff]  }
  0x83   :  { %1025 = vmatpush1.bf16.msra.mxu0 %v1595_v19  ;;  %940 = vmatprep.subr.bf16.mxu1 %v1600_v20  ;;  %v1679_v19 = vld [vmem:[#allocation7 + $0x8] sm:$0xff]   ;;  %v1680_v20 = vld [vmem:[#allocation7 + $0x50] sm:$0xff]  }
  0x84   :  { %1026 = vmatprep.subr.bf16.mxu0 %v1603_v21  ;;  %v1681_v21 = vld [vmem:[#allocation7 + $0x10] sm:$0xff]  }
  0x86   :  { %941 = vmatpush1.bf16.msra.mxu1 %v1598_v22  ;;  %v1682_v22 = vld [vmem:[#allocation7 + $0x58] sm:$0xff]  }
  0x87   :  { %1027 = vmatpush1.bf16.msra.mxu0 %v1601_v23  ;;  %942 = vmatprep.subr.bf16.mxu1 %v1606_v24  ;;  %v1683_v23 = vld [vmem:[#allocation7 + $0x18] sm:$0xff]   ;;  %v1684_v24 = vld [vmem:[#allocation7 + $0x60] sm:$0xff]  }
  0x88   :  { %1028 = vmatprep.subr.bf16.mxu0 %v1609_v25  ;;  %v1685_v25 = vld [vmem:[#allocation7 + $0x20] sm:$0xff]  }
  0x8a   :  { %943 = vmatpush1.bf16.msra.mxu1 %v1604_v26  ;;  %v1686_v26 = vld [vmem:[#allocation7 + $0x68] sm:$0xff]  }
  0x8b   :  { %1029 = vmatpush1.bf16.msra.mxu0 %v1607_v27  ;;  %944 = vmatprep.subr.bf16.mxu1 %v1612_v28  ;;  %v1687_v27 = vld [vmem:[#allocation7 + $0x28] sm:$0xff]   ;;  %v1688_v28 = vld [vmem:[#allocation7 + $0x70] sm:$0xff]  }
  0x8c   :  { %1030 = vmatprep.subr.bf16.mxu0 %v1615_v29  ;;  %v1689_v29 = vld [vmem:[#allocation7 + $0x30] sm:$0xff]  }
  0x8e   :  { %945 = vmatpush1.bf16.msra.mxu1 %v1610_v30  ;;  %v1690_v30 = vld [vmem:[#allocation7 + $0x78] sm:$0xff]  }
  0x8f   :  { %1031 = vmatpush1.bf16.msra.mxu0 %v1613_v31  ;;  %946 = vmatprep.subr.bf16.mxu1 %v1618_v32  ;;  %v1691_v31 = vld [vmem:[#allocation7 + $0x38] sm:$0xff]   ;;  %v201_v32 = vlaneseq }
  0x90   :  { %1032 = vmatprep.subr.bf16.mxu0 %v1621_v33 }
  0x91   :  { %v202_v33 = vshrl.u32 %v201_v32, 7 }
  0x92   :  { %947 = vmatpush1.bf16.msra.mxu1 %v1616_v34 }
  0x93   :  { %1033 = vmatpush1.bf16.msra.mxu0 %v1619_v35  ;;  %948 = vmatprep.subr.bf16.mxu1 %v1624_v40  ;;  %v203_v34 = vsub.s32 0, %v202_v33  ;;  %v199_v35 = vld [vmem:[%s1912_s2] sm:$0x3]  ;;  %v207_v36 = vsub.s32 1, %v202_v33 }
  0x94   :  { %1034 = vmatprep.subr.bf16.mxu0 %v1627_v42 }
  0x95   :  { %v204_v37 = vrot.slane %v199_v35, %v203_v34  ;;  %v208_v38 = vrot.slane %v199_v35, %v207_v36 }
  0x96   :  { %949 = vmatpush1.bf16.msra.mxu1 %v1622_v44 }
  0x97   :  { %1035 = vmatpush1.bf16.msra.mxu0 %v1625_v45  ;;  %950 = vmatprep.subr.bf16.mxu1 %v1630_v46 }
  0x98   :  { %1036 = vmatprep.subr.bf16.mxu0 %v1633_v47 }
  0x9a   :  { %951 = vmatpush1.bf16.msra.mxu1 %v1628_v48 }
  0x9b   :  { %1037 = vmatpush1.bf16.msra.mxu0 %v1631_v49  ;;  %952 = vmatprep.subr.bf16.mxu1 %v1636_v50 }
  0x9c   :  { %1038 = vmatprep.subr.bf16.mxu0 %v1639_v51 }
  0x9e   :  { %953 = vmatpush1.bf16.msra.mxu1 %v1634_v52 }
  0x9f   :  { %1039 = vmatpush1.bf16.msra.mxu0 %v1637_v53  ;;  %954 = vmatprep.subr.bf16.mxu1 %v1642_v54 }
  0xa0   :  { %1040 = vmatprep.subr.bf16.mxu0 %v1645_v55 }
  0xa2   :  { %955 = vmatpush1.bf16.msra.mxu1 %v1640_v56 }
  0xa3   :  { %1041 = vmatpush1.bf16.msra.mxu0 %v1643_v57  ;;  %956 = vmatprep.subr.bf16.mxu1 %v1648_v58 }
  0xa4   :  { %1042 = vmatprep.subr.bf16.mxu0 %v1651_v59 }
  0xa6   :  { %957 = vmatpush1.bf16.msra.mxu1 %v1646_v60 }
  0xa7   :  { %1043 = vmatpush1.bf16.msra.mxu0 %v1649_v61  ;;  %958 = vmatprep.subr.bf16.mxu1 %v1654_v62 }
  0xa8   :  { %1044 = vmatprep.subr.bf16.mxu0 %v1657_v63  ;;  %v1419_v63 = vld [vmem:[%s1914_s4] ss:$0 sm:$0xff]  ;;  %s1803_s4 = smov [#allocation8]  }
  0xa9   :  { %s1270_s12 = sshll.u32 %s1803_s4, 4  ;;  %s1271_s12 = int_to_ptr.vmem [resolvable:$true] %s1270_s12 }
  0xaa   :  { %959 = vmatpush1.bf16.msra.mxu1 %v1652_v0  ;;  %s1766_s13 = scalar_lea.vmem %s1271_s12, 256  ;;  %p1771_p11 = scmp.lt.s32.totalorder %s1271_s12, %s1271_s12 }
  0xab   :  { %1045 = vmatpush1.bf16.msra.mxu0 %v1655_v1  ;;  %960 = vmatprep.subr.bf16.mxu1 %v1660_v2  ;;  %p1767_p10 = scmp.ne.s32.totalorder %s1271_s12, %s1766_s13  ;;  %p1772_p12 = scmp.lt.s32.totalorder %s1766_s13, %s1766_s13 }
  0xac   :  { %1046 = vmatprep.subr.bf16.mxu0 %v1663_v3 }
  0xad   :  { %p1773_p13 = por %p1772_p12, %p1771_p11 }
  0xae   :  { %961 = vmatpush1.bf16.msra.mxu1 %v1658_v4 }
  0xaf   :  { %1047 = vmatpush1.bf16.msra.mxu0 %v1661_v5  ;;  %962 = vmatprep.subr.bf16.mxu1 %v1666_v6  ;;  %p1774_p0 = pnand %p1773_p13, %p1767_p10 }
  0xb0   :  { %1048 = vmatprep.subr.bf16.mxu0 %v1669_v7 }
  0xb2   :  { %963 = vmatpush1.bf16.msra.mxu1 %v1664_v8 }
  0xb3   :  { %1049 = vmatpush1.bf16.msra.mxu0 %v1667_v9  ;;  %964 = vmatprep.subr.bf16.mxu1 %v1672_v10 }
  0xb4   :  { %1050 = vmatprep.subr.bf16.mxu0 %v1675_v11 }
  0xb6   :  { %965 = vmatpush1.bf16.msra.mxu1 %v1670_v12 }
  0xb7   :  { %1051 = vmatpush1.bf16.msra.mxu0 %v1673_v13  ;;  %1436 = vmatprep.subr.bf16.mxu1 %v1676_v14 }
  0xb9   :  { %967 = vmatmul.mubr.bf16.vlgmr.msra.gmra.mrb[0].mxu1 %v1285_v15 }
  0xba   :  { %1053 = vmatmul.mubr.bf16.vlgmr.msra.gmra.mrb[0].mxu0 %v1289_v16  ;;  %1437 = vmatpush3.bf16.msra.mxu1 %v1677_v17 }
  0xbb   :  { %1438 = vmatprep.subr.bf16.mxu1 %v1678_v18 }
  0xbe   :  { %1439 = vmatpush3.bf16.msra.mxu1 %v1679_v19 }
  0xbf   :  { %1440 = vmatprep.subr.bf16.mxu1 %v1680_v20 }
  0xc2   :  { %1441 = vmatpush3.bf16.msra.mxu1 %v1681_v21 }
  0xc3   :  { %1442 = vmatprep.subr.bf16.mxu1 %v1682_v22 }
  0xc6   :  { %1443 = vmatpush3.bf16.msra.mxu1 %v1683_v23 }
  0xc7   :  { %1444 = vmatprep.subr.bf16.mxu1 %v1684_v24 }
  0xca   :  { %1445 = vmatpush3.bf16.msra.mxu1 %v1685_v25 }
  0xcb   :  { %1446 = vmatprep.subr.bf16.mxu1 %v1686_v26 }
  0xce   :  { %1447 = vmatpush3.bf16.msra.mxu1 %v1687_v27 }
  0xcf   :  { %1448 = vmatprep.subr.bf16.mxu1 %v1688_v28 }
  0xd2   :  { %1449 = vmatpush3.bf16.msra.mxu1 %v1689_v29 }
  0xd3   :  { %1450 = vmatprep.subr.bf16.mxu1 %v1690_v30 }
  0xd6   :  { %1451 = vmatpush3.bf16.msra.mxu1 %v1691_v31 }
 0x18c   :  { %v968_v39 = vpop.f32.mrb[0].mxu1 }
 0x18d   :  { %v1054_v40 = vpop.f32.mrb[0].mxu0  ;;  %v1458_v41 = vadd.f32 %v968_v39, %v204_v37  ;;  %v970_v42 = vpop.f32.mrb[1].mxu1 }
 0x18e   :  { %v1056_v43 = vpop.f32.mrb[1].mxu0  ;;  %v1460_v44 = vadd.f32 %v970_v42, %v208_v38  ;;  %v972_v45 = vpop.f32.mrb[2].mxu1 }
 0x18f   :  { %v1058_v46 = vpop.f32.mrb[2].mxu0  ;;  %v1459_v47 = vadd.f32 %v1458_v41, %v1054_v40  ;;  %v1462_v48 = vadd.f32 %v972_v45, %v204_v37  ;;  %v974_v49 = vpop.f32.mrb[3].mxu1 }
 0x190   :  { %v1060_v50 = vpop.f32.mrb[3].mxu0  ;;  %v1461_v51 = vadd.f32 %v1460_v44, %v1056_v43  ;;  %v1464_v52 = vadd.f32 %v974_v49, %v208_v38 }
 0x191   :  { %v1463_v53 = vadd.f32 %v1462_v48, %v1058_v46  ;;  %v1063_v55 = vmax.f32 %v1459_v47, 0.0 }
 0x192   :  { %v1465_v54 = vadd.f32 %v1464_v52, %v1060_v50  ;;  %v1064_v57 = vmax.f32 %v1461_v51, 0.0 }
 0x193   :  { %v1065_v56 = vmax.f32 %v1463_v53, 0.0 }
 0x194   :  { %v1066_v58 = vmax.f32 %v1465_v54, 0.0 }
 0x195   :  { %v1067_v59 = vpack.c.bf16 %v1065_v56, %v1063_v55 }
 0x196   :  { %v1068_v60 = vpack.c.bf16 %v1066_v58, %v1064_v57 }
 0x198   :  { %1236 = vmatprep.mubr.bf16.mxu1 %v1068_v60 }
 0x199   :  { %1237 = vmatmul.mubr.bf16.vlgmr.msra.gmra.mrb[4].mxu1 %v1067_v59 }
 0x26c   :  { %v1452_v61 = vpop.f32.mrb[4].mxu1 }
 0x26d   :  { %v1453_v62 = vpop.f32.mrb[5].mxu1 }
 0x26e   :  { %v1454_v0 = vadd.f32 %v1453_v62, %v1452_v61  ;;  %v1455_v1 = vpop.f32.mrb[6].mxu1 }
 0x26f   :  { %v1456_v2 = vpop.f32.mrb[7].mxu1 }
 0x270   :  { %v1457_v3 = vadd.f32 %v1456_v2, %v1455_v1  ;;  %v1239_v4 = vadd.f32 %v1454_v0, %v1419_v63 }
 0x272   :  { %1245 = vmax.xlane.f32.xlu0 %v1239_v4  ;;  %v1242_v5 = vadd.f32 %v1457_v3, %v1419_v63 }
 0x276   :  { %1247 = vmax.xlane.f32.xlu0 %v1242_v5 }
 0x2ff   :  { %v1246_v6 = vpop.xlane.xlu0 %1245 }
 0x300   :  { %v1249_v7 = vsub.f32 %v1239_v4, %v1246_v6 }
 0x302   :  { %v1251_v8 = vmul.f32 1.442695, %v1249_v7 }
 0x303   :  { %v1248_v9 = vpop.xlane.xlu0 %1247 }
 0x304   :  { %1692 = vpow2.f32 %v1251_v8  ;;  %v1250_v10 = vsub.f32 %v1242_v5, %v1248_v9 }
 0x306   :  { %v1253_v11 = vmul.f32 1.442695, %v1250_v10 }
 0x308   :  { %1694 = vpow2.f32 %v1253_v11 }
 0x30e   :  { %v1693_v12 = vpop.eup %1692 }
 0x30f   :  { %1255 = vadd.xlane.f32.xlu1 %v1693_v12 }
 0x312   :  { %v1695_v13 = vpop.eup %1694 }
 0x313   :  { %1257 = vadd.xlane.f32.xlu1 %v1695_v13 }
 0x39c   :  { %v1256_v14 = vpop.xlane.xlu1 %1255 }
 0x39d   :  { %1696 = vrcp.f32 %v1256_v14 }
 0x3a0   :  { %v1258_v15 = vpop.xlane.xlu1 %1257 }
 0x3a1   :  { %1698 = vrcp.f32 %v1258_v15 }
 0x3a7   :  { %v1697_v16 = vpop.eup %1696 }
 0x3a8   :  { %v1260_v17 = vmul.f32 %v1697_v16, %v1693_v12 }
 0x3aa   :  { %1263 = vst [vmem:[#allocation8] sm:$0xff] %v1260_v17 }
 0x3ab   :  { %v1699_v18 = vpop.eup %1698 }
 0x3ac   :  { %v1262_v19 = vmul.f32 %v1699_v18, %v1695_v13 }
 0x3ae   :  { %1264 = vst [vmem:[#allocation8 + $0x8] sm:$0xff] %v1262_v19 }
 0x3af   :  { %1777 = shalt.err (!%p1774_p0)
}
 0x3b0   :  { %s1778_s16 = scalar_lea.hbm %s1915_s5, 256 }
 0x3b1   :  { %p1779_p1 = scmp.ne.s32.totalorder %s1915_s5, %s1778_s16  ;;  %p1782_p2 = scmp.lt.u32.totalorder %s1778_s16, %s1915_s5 }
 0x3b3   :  { %p1784_p3 = pnand %p1782_p2, %p1779_p1 }
 0x3b5   :  { %1787 = shalt.err (!%p1784_p3)
}
 0x3b6   :  { %1276 = dma.vmem_to_hbm [thread:$0]  %s1271_s12, 256, %s1915_s5, [#allocation4], %s1795_s28, %s1795_s28, %s1796_s29  }
 0x3b7   :  { %1792 = dma.done.wait [#allocation4], 256  }
 0x3b8   :  { %1793 = vsyncadd [#allocation4], 4294967040 }
 0x3b9   :  { %1280 = vsyncpa [#allocation3], 1 }
 0x3ba   :  { %1281 = vsyncpa [#allocation6], 1 }
 0x3bb   :  { %1282 = vsyncpa [#allocation4], 1 }

// kernel: tpu_custom_call.1
= control target key start
LH: loop header
LB: loop body
LE: loop exit
PB: predicated region body
PF: predicated region fallthrough
CT: control target
= control target key end

     0   :  { %10 = vsyncpa [#allocation3], 0  ;;  %s1910_s0 = inlined_call_operand.hbm [shape: bf16[16,1024], index: 0, kind: input, shape index: {}]   ;;  %s1911_s1 = inlined_call_operand.hbm [shape: bf16[1024,256], index: 1, kind: input, shape index: {}]   ;;  %s1912_s2 = inlined_call_operand.vmem [shape: f32[1,256], index: 2, kind: input, shape index: {}]   ;;  %s1913_s3 = inlined_call_operand.hbm [shape: bf16[256,128], index: 3, kind: input, shape index: {}]   ;;  %s1914_s4 = inlined_call_operand.vmem [shape: f32[1,128], index: 4, kind: input, shape index: {}]   ;;  %s1915_s5 = inlined_call_operand.hbm [shape: f32[16,128], index: 5, kind: output, shape index: {}]  }
   0x1   :  { %11 = vsyncpa [#allocation6], 0 }
   0x2   :  { %12 = vsyncpa [#allocation4], 0  ;;  %s1794_s18 = smov [#allocation5]   ;;  %s1700_s22 = scalar_lea.hbm %s1911_s1, 16384 }
   0x3   :  { %s30_s19 = sshll.u32 %s1794_s18, 4  ;;  %p1701_p0 = scmp.ne.s32.totalorder %s1911_s1, %s1700_s22  ;;  %s31_s19 = int_to_ptr.vmem [resolvable:$true] %s30_s19 }
   0x4   :  { %p1704_p1 = scmp.lt.u32.totalorder %s1700_s22, %s1911_s1 }
   0x6   :  { %p1706_p2 = pnand %p1704_p1, %p1701_p0 }
   0x8   :  { %1709 = shalt.err (!%p1706_p2)
}
   0x9   :  { %s1710_s27 = scalar_lea.vmem %s31_s19, 16384  ;;  %p1715_p4 = scmp.lt.s32.totalorder %s31_s19, %s31_s19 }
   0xa   :  { %p1711_p3 = scmp.ne.s32.totalorder %s31_s19, %s1710_s27  ;;  %p1716_p5 = scmp.lt.s32.totalorder %s1710_s27, %s1710_s27 }
   0xc   :  { %p1717_p6 = por %p1716_p5, %p1715_p4 }
   0xe   :  { %p1718_p7 = pnand %p1717_p6, %p1711_p3 }
  0x10   :  { %1721 = shalt.err (!%p1718_p7)
}
  0x11   :  { %s1795_s28 = smov 128   ;;  %s1796_s29 = smov 8  }
  0x12   :  { %36 = dma.hbm_to_vmem [thread:$0]  %s1911_s1, 16384, %s31_s19, [#allocation6], %s1795_s28, %s1795_s28, %s1796_s29  }
  0x13   :  { %s1797_s7 = smov [#allocation2]   ;;  %s1722_s11 = scalar_lea.hbm %s1910_s0, 1024 }
  0x14   :  { %s18_s8 = sshll.u32 %s1797_s7, 4  ;;  %p1723_p8 = scmp.ne.s32.totalorder %s1910_s0, %s1722_s11  ;;  %s19_s8 = int_to_ptr.vmem [resolvable:$true] %s18_s8 }
  0x15   :  { %p1726_p9 = scmp.lt.u32.totalorder %s1722_s11, %s1910_s0 }
  0x17   :  { %p1728_p10 = pnand %p1726_p9, %p1723_p8 }
  0x19   :  { %1731 = shalt.err (!%p1728_p10)
}
  0x1a   :  { %s1732_s16 = scalar_lea.vmem %s19_s8, 1024  ;;  %p1737_p12 = scmp.lt.s32.totalorder %s19_s8, %s19_s8 }
  0x1b   :  { %p1733_p11 = scmp.ne.s32.totalorder %s19_s8, %s1732_s16  ;;  %p1738_p13 = scmp.lt.s32.totalorder %s1732_s16, %s1732_s16 }
  0x1d   :  { %p1739_p0 = por %p1738_p13, %p1737_p12 }
  0x1f   :  { %p1740_p1 = pnand %p1739_p0, %p1733_p11 }
  0x21   :  { %1743 = shalt.err (!%p1740_p1)
}
  0x22   :  { %s1798_s1 = smov 512   ;;  %s1799_s17 = smov 32  }
  0x23   :  { %24 = dma.hbm_to_vmem [thread:$0]  %s1910_s0, 1024, %s19_s8, [#allocation3], %s1798_s1, %s1798_s1, %s1799_s17  }
  0x24   :  { %s1800_s20 = smov [#allocation7]   ;;  %s1744_s24 = scalar_lea.hbm %s1913_s3, 2048 }
  0x25   :  { %s44_s21 = sshll.u32 %s1800_s20, 4  ;;  %p1745_p2 = scmp.ne.s32.totalorder %s1913_s3, %s1744_s24  ;;  %s45_s21 = int_to_ptr.vmem [resolvable:$true] %s44_s21 }
  0x26   :  { %p1748_p3 = scmp.lt.u32.totalorder %s1744_s24, %s1913_s3 }
  0x28   :  { %p1750_p4 = pnand %p1748_p3, %p1745_p2 }
  0x2a   :  { %1753 = shalt.err (!%p1750_p4)
}
  0x2b   :  { %s1754_s6 = scalar_lea.vmem %s45_s21, 2048  ;;  %p1759_p6 = scmp.lt.s32.totalorder %s45_s21, %s45_s21 }
  0x2c   :  { %p1755_p5 = scmp.ne.s32.totalorder %s45_s21, %s1754_s6  ;;  %p1760_p7 = scmp.lt.s32.totalorder %s1754_s6, %s1754_s6 }
  0x2e   :  { %p1761_p8 = por %p1760_p7, %p1759_p6 }
  0x30   :  { %p1762_p9 = pnand %p1761_p8, %p1755_p5 }
  0x32   :  { %1765 = shalt.err (!%p1762_p9)
}
  0x33   :  { %s1801_s0 = smov 64   ;;  %s1802_s7 = smov 4  }
  0x34   :  { %50 = dma.hbm_to_vmem [thread:$0]  %s1913_s3, 2048, %s45_s21, [#allocation6], %s1801_s0, %s1801_s0, %s1802_s7  }
  0x35   :  { %1788 = dma.done.wait [#allocation3], 1024  }
  0x36   :  { %1789 = vsyncadd [#allocation3], 4294966272 }
  0x37   :  { %1790 = dma.done.wait [#allocation6], 18432  }
  0x38   :  { %1791 = vsyncadd [#allocation6], 4294948864  ;;  %v1484_v0 = vld [vmem:[#allocation5 + $0x4] ss:$8 sps:$4 sm:$0xff]   ;;  %v1488_v2 = vld [vmem:[#allocation5] ss:$8 sps:$4 sm:$0xff]  }
  0x39   :  { %v1486_v1 = vld [vmem:[#allocation5 + $0x204] ss:$8 sps:$4 sm:$0xff]   ;;  %891 = vmatprep.subr.bf16.mxu1 %v1484_v0  ;;  %v1489_v3 = vld [vmem:[#allocation5 + $0x200] ss:$8 sps:$4 sm:$0xff]   ;;  %v1490_v4 = vld [vmem:[#allocation5 + $0x14] ss:$8 sps:$4 sm:$0xff]  }
  0x3a   :  { %977 = vmatprep.subr.bf16.mxu0 %v1486_v1  ;;  %892 = vmatpush1.bf16.msra.mxu1 %v1488_v2  ;;  %v1492_v5 = vld [vmem:[#allocation5 + $0x214] ss:$8 sps:$4 sm:$0xff]   ;;  %v1494_v6 = vld [vmem:[#allocation5 + $0x10] ss:$8 sps:$4 sm:$0xff]   ;;  %v1496_v8 = vld [vmem:[#allocation5 + $0x24] ss:$8 sps:$4 sm:$0xff]  }
  0x3b   :  { %978 = vmatpush1.bf16.msra.mxu0 %v1489_v3  ;;  %893 = vmatprep.subr.bf16.mxu1 %v1490_v4  ;;  %v1495_v7 = vld [vmem:[#allocation5 + $0x210] ss:$8 sps:$4 sm:$0xff]   ;;  %v1498_v9 = vld [vmem:[#allocation5 + $0x224] ss:$8 sps:$4 sm:$0xff]   ;;  %v1500_v10 = vld [vmem:[#allocation5 + $0x20] ss:$8 sps:$4 sm:$0xff]  }
  0x3c   :  { %979 = vmatprep.subr.bf16.mxu0 %v1492_v5  ;;  %v1501_v11 = vld [vmem:[#allocation5 + $0x220] ss:$8 sps:$4 sm:$0xff]   ;;  %v1502_v12 = vld [vmem:[#allocation5 + $0x34] ss:$8 sps:$4 sm:$0xff]   ;;  %v1506_v14 = vld [vmem:[#allocation5 + $0x30] ss:$8 sps:$4 sm:$0xff]  }
  0x3d   :  { %v1504_v13 = vld [vmem:[#allocation5 + $0x234] ss:$8 sps:$4 sm:$0xff]   ;;  %v1507_v15 = vld [vmem:[#allocation5 + $0x230] ss:$8 sps:$4 sm:$0xff]   ;;  %v1508_v16 = vld [vmem:[#allocation5 + $0x44] ss:$8 sps:$4 sm:$0xff]  }
  0x3e   :  { %894 = vmatpush1.bf16.msra.mxu1 %v1494_v6  ;;  %v1510_v17 = vld [vmem:[#allocation5 + $0x244] ss:$8 sps:$4 sm:$0xff]   ;;  %v1512_v18 = vld [vmem:[#allocation5 + $0x40] ss:$8 sps:$4 sm:$0xff]   ;;  %v1514_v20 = vld [vmem:[#allocation5 + $0x54] ss:$8 sps:$4 sm:$0xff]  }
  0x3f   :  { %980 = vmatpush1.bf16.msra.mxu0 %v1495_v7  ;;  %895 = vmatprep.subr.bf16.mxu1 %v1496_v8  ;;  %v1513_v19 = vld [vmem:[#allocation5 + $0x240] ss:$8 sps:$4 sm:$0xff]   ;;  %v1516_v21 = vld [vmem:[#allocation5 + $0x254] ss:$8 sps:$4 sm:$0xff]   ;;  %v1518_v22 = vld [vmem:[#allocation5 + $0x50] ss:$8 sps:$4 sm:$0xff]  }
  0x40   :  { %981 = vmatprep.subr.bf16.mxu0 %v1498_v9  ;;  %v1519_v23 = vld [vmem:[#allocation5 + $0x250] ss:$8 sps:$4 sm:$0xff]   ;;  %v1520_v24 = vld [vmem:[#allocation5 + $0x64] ss:$8 sps:$4 sm:$0xff]   ;;  %v1524_v26 = vld [vmem:[#allocation5 + $0x60] ss:$8 sps:$4 sm:$0xff]  }
  0x41   :  { %v1522_v25 = vld [vmem:[#allocation5 + $0x264] ss:$8 sps:$4 sm:$0xff]   ;;  %v1525_v27 = vld [vmem:[#allocation5 + $0x260] ss:$8 sps:$4 sm:$0xff]   ;;  %v1526_v28 = vld [vmem:[#allocation5 + $0x74] ss:$8 sps:$4 sm:$0xff]  }
  0x42   :  { %896 = vmatpush1.bf16.msra.mxu1 %v1500_v10  ;;  %v1528_v29 = vld [vmem:[#allocation5 + $0x274] ss:$8 sps:$4 sm:$0xff]   ;;  %v1530_v30 = vld [vmem:[#allocation5 + $0x70] ss:$8 sps:$4 sm:$0xff]   ;;  %v1532_v32 = vld [vmem:[#allocation5 + $0x84] ss:$8 sps:$4 sm:$0xff]  }
  0x43   :  { %982 = vmatpush1.bf16.msra.mxu0 %v1501_v11  ;;  %897 = vmatprep.subr.bf16.mxu1 %v1502_v12  ;;  %v1531_v31 = vld [vmem:[#allocation5 + $0x270] ss:$8 sps:$4 sm:$0xff]   ;;  %v1534_v33 = vld [vmem:[#allocation5 + $0x284] ss:$8 sps:$4 sm:$0xff]   ;;  %v1536_v34 = vld [vmem:[#allocation5 + $0x80] ss:$8 sps:$4 sm:$0xff]  }
  0x44   :  { %983 = vmatprep.subr.bf16.mxu0 %v1504_v13  ;;  %v1537_v35 = vld [vmem:[#allocation5 + $0x280] ss:$8 sps:$4 sm:$0xff]   ;;  %v1538_v36 = vld [vmem:[#allocation5 + $0x94] ss:$8 sps:$4 sm:$0xff]   ;;  %v1542_v38 = vld [vmem:[#allocation5 + $0x90] ss:$8 sps:$4 sm:$0xff]  }
  0x45   :  { %v1540_v37 = vld [vmem:[#allocation5 + $0x294] ss:$8 sps:$4 sm:$0xff]   ;;  %v1543_v39 = vld [vmem:[#allocation5 + $0x290] ss:$8 sps:$4 sm:$0xff]   ;;  %v1544_v40 = vld [vmem:[#allocation5 + $0xa4] ss:$8 sps:$4 sm:$0xff]  }
  0x46   :  { %898 = vmatpush1.bf16.msra.mxu1 %v1506_v14  ;;  %v1546_v41 = vld [vmem:[#allocation5 + $0x2a4] ss:$8 sps:$4 sm:$0xff]   ;;  %v1548_v42 = vld [vmem:[#allocation5 + $0xa0] ss:$8 sps:$4 sm:$0xff]   ;;  %v1550_v44 = vld [vmem:[#allocation5 + $0xb4] ss:$8 sps:$4 sm:$0xff]  }
  0x47   :  { %984 = vmatpush1.bf16.msra.mxu0 %v1507_v15  ;;  %899 = vmatprep.subr.bf16.mxu1 %v1508_v16  ;;  %v1549_v43 = vld [vmem:[#allocation5 + $0x2a0] ss:$8 sps:$4 sm:$0xff]   ;;  %v1552_v45 = vld [vmem:[#allocation5 + $0x2b4] ss:$8 sps:$4 sm:$0xff]   ;;  %v1554_v46 = vld [vmem:[#allocation5 + $0xb0] ss:$8 sps:$4 sm:$0xff]  }
  0x48   :  { %985 = vmatprep.subr.bf16.mxu0 %v1510_v17  ;;  %v1555_v47 = vld [vmem:[#allocation5 + $0x2b0] ss:$8 sps:$4 sm:$0xff]   ;;  %v63_v48 = vld [vmem:[#allocation2] sm:$0xff]  ;;  %v1562_v58 = vld [vmem:[#allocation5 + $0xd4] ss:$8 sps:$4 sm:$0xff]  }
  0x49   :  { %v67_v49 = vld [vmem:[#allocation2 + $0x20] sm:$0xff]  ;;  %v65_v53 = vld [vmem:[#allocation2 + $0x10] sm:$0xff] }
  0x4a   :  { %900 = vmatpush1.bf16.msra.mxu1 %v1512_v18  ;;  %v1556_v50 = vld [vmem:[#allocation5 + $0xc4] ss:$8 sps:$4 sm:$0xff]   ;;  %v1284_v52 = vcombine.high %v63_v48, %v67_v49  ;;  %v69_v54 = vld [vmem:[#allocation2 + $0x30] sm:$0xff]  ;;  %v1560_v56 = vld [vmem:[#allocation5 + $0xc0] ss:$8 sps:$4 sm:$0xff]   ;;  %v1283_v8 = vcombine.low %v63_v48, %v67_v49 }
  0x4b   :  { %986 = vmatpush1.bf16.msra.mxu0 %v1513_v19  ;;  %901 = vmatprep.subr.bf16.mxu1 %v1514_v20  ;;  %v1558_v51 = vld [vmem:[#allocation5 + $0x2c4] ss:$8 sps:$4 sm:$0xff]   ;;  %v1288_v55 = vcombine.high %v65_v53, %v69_v54  ;;  %v1561_v57 = vld [vmem:[#allocation5 + $0x2c0] ss:$8 sps:$4 sm:$0xff]   ;;  %v1564_v59 = vld [vmem:[#allocation5 + $0x2d4] ss:$8 sps:$4 sm:$0xff]   ;;  %v1287_v10 = vcombine.low %v65_v53, %v69_v54 }
  0x4c   :  { %987 = vmatprep.subr.bf16.mxu0 %v1516_v21  ;;  %923 = vmatprep.mubr.bf16.mxu1 %v1284_v52  ;;  %v1566_v60 = vld [vmem:[#allocation5 + $0xd0] ss:$8 sps:$4 sm:$0xff]   ;;  %v1568_v62 = vld [vmem:[#allocation5 + $0xe4] ss:$8 sps:$4 sm:$0xff]   ;;  %v1572_v0 = vld [vmem:[#allocation5 + $0xe0] ss:$8 sps:$4 sm:$0xff]  }
  0x4d   :  { %1009 = vmatprep.mubr.bf16.mxu0 %v1288_v55  ;;  %v1567_v61 = vld [vmem:[#allocation5 + $0x2d0] ss:$8 sps:$4 sm:$0xff]   ;;  %v1570_v63 = vld [vmem:[#allocation5 + $0x2e4] ss:$8 sps:$4 sm:$0xff]   ;;  %v1573_v1 = vld [vmem:[#allocation5 + $0x2e0] ss:$8 sps:$4 sm:$0xff]  }
  0x4e   :  { %902 = vmatpush1.bf16.msra.mxu1 %v1518_v22  ;;  %v1574_v2 = vld [vmem:[#allocation5 + $0xf4] ss:$8 sps:$4 sm:$0xff]   ;;  %v1578_v4 = vld [vmem:[#allocation5 + $0xf0] ss:$8 sps:$4 sm:$0xff]   ;;  %v1582_v6 = vld [vmem:[#allocation5 + $0x104] ss:$8 sps:$4 sm:$0xff]  }
  0x4f   :  { %988 = vmatpush1.bf16.msra.mxu0 %v1519_v23  ;;  %903 = vmatprep.subr.bf16.mxu1 %v1520_v24  ;;  %v1576_v3 = vld [vmem:[#allocation5 + $0x2f4] ss:$8 sps:$4 sm:$0xff]   ;;  %v1579_v5 = vld [vmem:[#allocation5 + $0x2f0] ss:$8 sps:$4 sm:$0xff]   ;;  %v1585_v7 = vld [vmem:[#allocation5 + $0x304] ss:$8 sps:$4 sm:$0xff]  }
  0x50   :  { %989 = vmatprep.subr.bf16.mxu0 %v1522_v25  ;;  %v1580_v9 = vld [vmem:[#allocation5 + $0x100] ss:$8 sps:$4 sm:$0xff]   ;;  %v1588_v12 = vld [vmem:[#allocation5 + $0x114] ss:$8 sps:$4 sm:$0xff]   ;;  %v1586_v14 = vld [vmem:[#allocation5 + $0x110] ss:$8 sps:$4 sm:$0xff]  }
  0x51   :  { %v1583_v11 = vld [vmem:[#allocation5 + $0x300] ss:$8 sps:$4 sm:$0xff]   ;;  %v1591_v13 = vld [vmem:[#allocation5 + $0x314] ss:$8 sps:$4 sm:$0xff]   ;;  %v1589_v15 = vld [vmem:[#allocation5 + $0x310] ss:$8 sps:$4 sm:$0xff]  }
  0x52   :  { %904 = vmatpush1.bf16.msra.mxu1 %v1524_v26  ;;  %v1594_v16 = vld [vmem:[#allocation5 + $0x124] ss:$8 sps:$4 sm:$0xff]   ;;  %v1592_v18 = vld [vmem:[#allocation5 + $0x120] ss:$8 sps:$4 sm:$0xff]   ;;  %v1600_v20 = vld [vmem:[#allocation5 + $0x134] ss:$8 sps:$4 sm:$0xff]  }
  0x53   :  { %990 = vmatpush1.bf16.msra.mxu0 %v1525_v27  ;;  %905 = vmatprep.subr.bf16.mxu1 %v1526_v28  ;;  %v1597_v17 = vld [vmem:[#allocation5 + $0x324] ss:$8 sps:$4 sm:$0xff]   ;;  %v1595_v19 = vld [vmem:[#allocation5 + $0x320] ss:$8 sps:$4 sm:$0xff]   ;;  %v1603_v21 = vld [vmem:[#allocation5 + $0x334] ss:$8 sps:$4 sm:$0xff]  }
  0x54   :  { %991 = vmatprep.subr.bf16.mxu0 %v1528_v29  ;;  %v1598_v22 = vld [vmem:[#allocation5 + $0x130] ss:$8 sps:$4 sm:$0xff]   ;;  %v1606_v24 = vld [vmem:[#allocation5 + $0x144] ss:$8 sps:$4 sm:$0xff]   ;;  %v1604_v26 = vld [vmem:[#allocation5 + $0x140] ss:$8 sps:$4 sm:$0xff]  }
  0x55   :  { %v1601_v23 = vld [vmem:[#allocation5 + $0x330] ss:$8 sps:$4 sm:$0xff]   ;;  %v1609_v25 = vld [vmem:[#allocation5 + $0x344] ss:$8 sps:$4 sm:$0xff]   ;;  %v1607_v27 = vld [vmem:[#allocation5 + $0x340] ss:$8 sps:$4 sm:$0xff]  }
  0x56   :  { %906 = vmatpush1.bf16.msra.mxu1 %v1530_v30  ;;  %v1612_v28 = vld [vmem:[#allocation5 + $0x154] ss:$8 sps:$4 sm:$0xff]   ;;  %v1610_v30 = vld [vmem:[#allocation5 + $0x150] ss:$8 sps:$4 sm:$0xff]   ;;  %v1628_v48 = vld [vmem:[#allocation5 + $0x180] ss:$8 sps:$4 sm:$0xff]  }
  0x57   :  { %992 = vmatpush1.bf16.msra.mxu0 %v1531_v31  ;;  %907 = vmatprep.subr.bf16.mxu1 %v1532_v32  ;;  %v1615_v29 = vld [vmem:[#allocation5 + $0x354] ss:$8 sps:$4 sm:$0xff]   ;;  %v1613_v31 = vld [vmem:[#allocation5 + $0x350] ss:$8 sps:$4 sm:$0xff]   ;;  %v1618_v32 = vld [vmem:[#allocation5 + $0x164] ss:$8 sps:$4 sm:$0xff]  }
  0x58   :  { %993 = vmatprep.subr.bf16.mxu0 %v1534_v33  ;;  %v1621_v33 = vld [vmem:[#allocation5 + $0x364] ss:$8 sps:$4 sm:$0xff]   ;;  %v1631_v49 = vld [vmem:[#allocation5 + $0x380] ss:$8 sps:$4 sm:$0xff]   ;;  %v1634_v52 = vld [vmem:[#allocation5 + $0x190] ss:$8 sps:$4 sm:$0xff]  }
  0x59   :  { %v1637_v53 = vld [vmem:[#allocation5 + $0x390] ss:$8 sps:$4 sm:$0xff]   ;;  %v1642_v54 = vld [vmem:[#allocation5 + $0x1a4] ss:$8 sps:$4 sm:$0xff]  }
  0x5a   :  { %908 = vmatpush1.bf16.msra.mxu1 %v1536_v34  ;;  %v1616_v34 = vld [vmem:[#allocation5 + $0x160] ss:$8 sps:$4 sm:$0xff]   ;;  %v1645_v55 = vld [vmem:[#allocation5 + $0x3a4] ss:$8 sps:$4 sm:$0xff]  }
  0x5b   :  { %994 = vmatpush1.bf16.msra.mxu0 %v1537_v35  ;;  %909 = vmatprep.subr.bf16.mxu1 %v1538_v36  ;;  %v1619_v35 = vld [vmem:[#allocation5 + $0x360] ss:$8 sps:$4 sm:$0xff]  }
  0x5c   :  { %995 = vmatprep.subr.bf16.mxu0 %v1540_v37  ;;  %v1873_v36 = vld [vmem:[#allocation2 + $0x8] sm:$0xff] }
  0x5d   :  { %v1875_v37 = vld [vmem:[#allocation2 + $0x28] sm:$0xff] }
  0x5e   :  { %910 = vmatpush1.bf16.msra.mxu1 %v1542_v38  ;;  %v1877_v38 = vld [vmem:[#allocation2 + $0x18] sm:$0xff] }
  0x5f   :  { %996 = vmatpush1.bf16.msra.mxu0 %v1543_v39  ;;  %911 = vmatprep.subr.bf16.mxu1 %v1544_v40  ;;  %v1879_v39 = vld [vmem:[#allocation2 + $0x38] sm:$0xff] }
  0x60   :  { %997 = vmatprep.subr.bf16.mxu0 %v1546_v41  ;;  %v1624_v40 = vld [vmem:[#allocation5 + $0x174] ss:$8 sps:$4 sm:$0xff]   ;;  %v1286_v41 = vcombine.high %v1873_v36, %v1875_v37 }
  0x62   :  { %912 = vmatpush1.bf16.msra.mxu1 %v1548_v42  ;;  %v1627_v42 = vld [vmem:[#allocation5 + $0x374] ss:$8 sps:$4 sm:$0xff]  }
  0x63   :  { %998 = vmatpush1.bf16.msra.mxu0 %v1549_v43  ;;  %913 = vmatprep.subr.bf16.mxu1 %v1550_v44  ;;  %v1290_v43 = vcombine.high %v1877_v38, %v1879_v39  ;;  %v1622_v44 = vld [vmem:[#allocation5 + $0x170] ss:$8 sps:$4 sm:$0xff]  }
  0x64   :  { %999 = vmatprep.subr.bf16.mxu0 %v1552_v45  ;;  %v1625_v45 = vld [vmem:[#allocation5 + $0x370] ss:$8 sps:$4 sm:$0xff]  }
  0x66   :  { %914 = vmatpush1.bf16.msra.mxu1 %v1554_v46  ;;  %v1630_v46 = vld [vmem:[#allocation5 + $0x184] ss:$8 sps:$4 sm:$0xff]  }
  0x67   :  { %1000 = vmatpush1.bf16.msra.mxu0 %v1555_v47  ;;  %915 = vmatprep.subr.bf16.mxu1 %v1556_v50  ;;  %v1633_v47 = vld [vmem:[#allocation5 + $0x384] ss:$8 sps:$4 sm:$0xff]   ;;  %v1636_v50 = vld [vmem:[#allocation5 + $0x194] ss:$8 sps:$4 sm:$0xff]  }
  0x68   :  { %1001 = vmatprep.subr.bf16.mxu0 %v1558_v51  ;;  %v1639_v51 = vld [vmem:[#allocation5 + $0x394] ss:$8 sps:$4 sm:$0xff]  }
  0x6a   :  { %916 = vmatpush1.bf16.msra.mxu1 %v1560_v56  ;;  %v1640_v56 = vld [vmem:[#allocation5 + $0x1a0] ss:$8 sps:$4 sm:$0xff]  }
  0x6b   :  { %1002 = vmatpush1.bf16.msra.mxu0 %v1561_v57  ;;  %917 = vmatprep.subr.bf16.mxu1 %v1562_v58  ;;  %v1643_v57 = vld [vmem:[#allocation5 + $0x3a0] ss:$8 sps:$4 sm:$0xff]   ;;  %v1648_v58 = vld [vmem:[#allocation5 + $0x1b4] ss:$8 sps:$4 sm:$0xff]  }
  0x6c   :  { %1003 = vmatprep.subr.bf16.mxu0 %v1564_v59  ;;  %v1651_v59 = vld [vmem:[#allocation5 + $0x3b4] ss:$8 sps:$4 sm:$0xff]  }
  0x6e   :  { %918 = vmatpush1.bf16.msra.mxu1 %v1566_v60  ;;  %v1646_v60 = vld [vmem:[#allocation5 + $0x1b0] ss:$8 sps:$4 sm:$0xff]  }
  0x6f   :  { %1004 = vmatpush1.bf16.msra.mxu0 %v1567_v61  ;;  %919 = vmatprep.subr.bf16.mxu1 %v1568_v62  ;;  %v1649_v61 = vld [vmem:[#allocation5 + $0x3b0] ss:$8 sps:$4 sm:$0xff]   ;;  %v1654_v62 = vld [vmem:[#allocation5 + $0x1c4] ss:$8 sps:$4 sm:$0xff]  }
  0x70   :  { %1005 = vmatprep.subr.bf16.mxu0 %v1570_v63  ;;  %v1657_v63 = vld [vmem:[#allocation5 + $0x3c4] ss:$8 sps:$4 sm:$0xff]  }
  0x72   :  { %920 = vmatpush1.bf16.msra.mxu1 %v1572_v0  ;;  %v1652_v0 = vld [vmem:[#allocation5 + $0x1c0] ss:$8 sps:$4 sm:$0xff]  }
  0x73   :  { %1006 = vmatpush1.bf16.msra.mxu0 %v1573_v1  ;;  %921 = vmatprep.subr.bf16.mxu1 %v1574_v2  ;;  %v1655_v1 = vld [vmem:[#allocation5 + $0x3c0] ss:$8 sps:$4 sm:$0xff]   ;;  %v1660_v2 = vld [vmem:[#allocation5 + $0x1d4] ss:$8 sps:$4 sm:$0xff]  }
  0x74   :  { %1007 = vmatprep.subr.bf16.mxu0 %v1576_v3  ;;  %v1663_v3 = vld [vmem:[#allocation5 + $0x3d4] ss:$8 sps:$4 sm:$0xff]  }
  0x76   :  { %922 = vmatpush1.bf16.msra.mxu1 %v1578_v4  ;;  %v1658_v4 = vld [vmem:[#allocation5 + $0x1d0] ss:$8 sps:$4 sm:$0xff]  }
  0x77   :  { %1008 = vmatpush1.bf16.msra.mxu0 %v1579_v5  ;;  %934 = vmatprep.subr.bf16.mxu1 %v1582_v6  ;;  %v1661_v5 = vld [vmem:[#allocation5 + $0x3d0] ss:$8 sps:$4 sm:$0xff]   ;;  %v1666_v6 = vld [vmem:[#allocation5 + $0x1e4] ss:$8 sps:$4 sm:$0xff]  }
  0x78   :  { %1020 = vmatprep.subr.bf16.mxu0 %v1585_v7  ;;  %v1669_v7 = vld [vmem:[#allocation5 + $0x3e4] ss:$8 sps:$4 sm:$0xff]  }
  0x79   :  { %924 = vmatmul.mubr.bf16.vlgmr.msra.gmra.mrb[0].mxu1 %v1283_v8  ;;  %v1664_v8 = vld [vmem:[#allocation5 + $0x1e0] ss:$8 sps:$4 sm:$0xff]  }
  0x7a   :  { %1010 = vmatmul.mubr.bf16.vlgmr.msra.gmra.mrb[0].mxu0 %v1287_v10  ;;  %935 = vmatpush1.bf16.msra.mxu1 %v1580_v9  ;;  %v1667_v9 = vld [vmem:[#allocation5 + $0x3e0] ss:$8 sps:$4 sm:$0xff]   ;;  %v1672_v10 = vld [vmem:[#allocation5 + $0x1f4] ss:$8 sps:$4 sm:$0xff]  }
  0x7b   :  { %1021 = vmatpush1.bf16.msra.mxu0 %v1583_v11  ;;  %936 = vmatprep.subr.bf16.mxu1 %v1588_v12  ;;  %v1675_v11 = vld [vmem:[#allocation5 + $0x3f4] ss:$8 sps:$4 sm:$0xff]   ;;  %v1670_v12 = vld [vmem:[#allocation5 + $0x1f0] ss:$8 sps:$4 sm:$0xff]  }
  0x7c   :  { %1022 = vmatprep.subr.bf16.mxu0 %v1591_v13  ;;  %966 = vmatprep.mubr.bf16.mxu1 %v1286_v41  ;;  %v1673_v13 = vld [vmem:[#allocation5 + $0x3f0] ss:$8 sps:$4 sm:$0xff]  }
  0x7d   :  { %1052 = vmatprep.mubr.bf16.mxu0 %v1290_v43 }
  0x7e   :  { %937 = vmatpush1.bf16.msra.mxu1 %v1586_v14  ;;  %v1676_v14 = vld [vmem:[#allocation7 + $0x40] sm:$0xff]  }
  0x7f   :  { %1023 = vmatpush1.bf16.msra.mxu0 %v1589_v15  ;;  %938 = vmatprep.subr.bf16.mxu1 %v1594_v16  ;;  %v1285_v15 = vcombine.low %v1873_v36, %v1875_v37  ;;  %v1289_v16 = vcombine.low %v1877_v38, %v1879_v39 }
  0x80   :  { %1024 = vmatprep.subr.bf16.mxu0 %v1597_v17  ;;  %v1677_v17 = vld [vmem:[#allocation7] sm:$0xff]  }
  0x82   :  { %939 = vmatpush1.bf16.msra.mxu1 %v1592_v18  ;;  %v1678_v18 = vld [vmem:[#allocation7 + $0x48] sm:$0xff]  }
  0x83   :  { %1025 = vmatpush1.bf16.msra.mxu0 %v1595_v19  ;;  %940 = vmatprep.subr.bf16.mxu1 %v1600_v20  ;;  %v1679_v19 = vld [vmem:[#allocation7 + $0x8] sm:$0xff]   ;;  %v1680_v20 = vld [vmem:[#allocation7 + $0x50] sm:$0xff]  }
  0x84   :  { %1026 = vmatprep.subr.bf16.mxu0 %v1603_v21  ;;  %v1681_v21 = vld [vmem:[#allocation7 + $0x10] sm:$0xff]  }
  0x86   :  { %941 = vmatpush1.bf16.msra.mxu1 %v1598_v22  ;;  %v1682_v22 = vld [vmem:[#allocation7 + $0x58] sm:$0xff]  }
  0x87   :  { %1027 = vmatpush1.bf16.msra.mxu0 %v1601_v23  ;;  %942 = vmatprep.subr.bf16.mxu1 %v1606_v24  ;;  %v1683_v23 = vld [vmem:[#allocation7 + $0x18] sm:$0xff]   ;;  %v1684_v24 = vld [vmem:[#allocation7 + $0x60] sm:$0xff]  }
  0x88   :  { %1028 = vmatprep.subr.bf16.mxu0 %v1609_v25  ;;  %v1685_v25 = vld [vmem:[#allocation7 + $0x20] sm:$0xff]  }
  0x8a   :  { %943 = vmatpush1.bf16.msra.mxu1 %v1604_v26  ;;  %v1686_v26 = vld [vmem:[#allocation7 + $0x68] sm:$0xff]  }
  0x8b   :  { %1029 = vmatpush1.bf16.msra.mxu0 %v1607_v27  ;;  %944 = vmatprep.subr.bf16.mxu1 %v1612_v28  ;;  %v1687_v27 = vld [vmem:[#allocation7 + $0x28] sm:$0xff]   ;;  %v1688_v28 = vld [vmem:[#allocation7 + $0x70] sm:$0xff]  }
  0x8c   :  { %1030 = vmatprep.subr.bf16.mxu0 %v1615_v29  ;;  %v1689_v29 = vld [vmem:[#allocation7 + $0x30] sm:$0xff]  }
  0x8e   :  { %945 = vmatpush1.bf16.msra.mxu1 %v1610_v30  ;;  %v1690_v30 = vld [vmem:[#allocation7 + $0x78] sm:$0xff]  }
  0x8f   :  { %1031 = vmatpush1.bf16.msra.mxu0 %v1613_v31  ;;  %946 = vmatprep.subr.bf16.mxu1 %v1618_v32  ;;  %v1691_v31 = vld [vmem:[#allocation7 + $0x38] sm:$0xff]   ;;  %v201_v32 = vlaneseq }
  0x90   :  { %1032 = vmatprep.subr.bf16.mxu0 %v1621_v33 }
  0x91   :  { %v202_v33 = vshrl.u32 %v201_v32, 7 }
  0x92   :  { %947 = vmatpush1.bf16.msra.mxu1 %v1616_v34 }
  0x93   :  { %1033 = vmatpush1.bf16.msra.mxu0 %v1619_v35  ;;  %948 = vmatprep.subr.bf16.mxu1 %v1624_v40  ;;  %v203_v34 = vsub.s32 0, %v202_v33  ;;  %v199_v35 = vld [vmem:[%s1912_s2] sm:$0x3]  ;;  %v207_v36 = vsub.s32 1, %v202_v33 }
  0x94   :  { %1034 = vmatprep.subr.bf16.mxu0 %v1627_v42 }
  0x95   :  { %v204_v37 = vrot.slane %v199_v35, %v203_v34  ;;  %v208_v38 = vrot.slane %v199_v35, %v207_v36 }
  0x96   :  { %949 = vmatpush1.bf16.msra.mxu1 %v1622_v44 }
  0x97   :  { %1035 = vmatpush1.bf16.msra.mxu0 %v1625_v45  ;;  %950 = vmatprep.subr.bf16.mxu1 %v1630_v46 }
  0x98   :  { %1036 = vmatprep.subr.bf16.mxu0 %v1633_v47 }
  0x9a   :  { %951 = vmatpush1.bf16.msra.mxu1 %v1628_v48 }
  0x9b   :  { %1037 = vmatpush1.bf16.msra.mxu0 %v1631_v49  ;;  %952 = vmatprep.subr.bf16.mxu1 %v1636_v50 }
  0x9c   :  { %1038 = vmatprep.subr.bf16.mxu0 %v1639_v51 }
  0x9e   :  { %953 = vmatpush1.bf16.msra.mxu1 %v1634_v52 }
  0x9f   :  { %1039 = vmatpush1.bf16.msra.mxu0 %v1637_v53  ;;  %954 = vmatprep.subr.bf16.mxu1 %v1642_v54 }
  0xa0   :  { %1040 = vmatprep.subr.bf16.mxu0 %v1645_v55 }
  0xa2   :  { %955 = vmatpush1.bf16.msra.mxu1 %v1640_v56 }
  0xa3   :  { %1041 = vmatpush1.bf16.msra.mxu0 %v1643_v57  ;;  %956 = vmatprep.subr.bf16.mxu1 %v1648_v58 }
  0xa4   :  { %1042 = vmatprep.subr.bf16.mxu0 %v1651_v59 }
  0xa6   :  { %957 = vmatpush1.bf16.msra.mxu1 %v1646_v60 }
  0xa7   :  { %1043 = vmatpush1.bf16.msra.mxu0 %v1649_v61  ;;  %958 = vmatprep.subr.bf16.mxu1 %v1654_v62 }
  0xa8   :  { %1044 = vmatprep.subr.bf16.mxu0 %v1657_v63  ;;  %v1419_v63 = vld [vmem:[%s1914_s4] ss:$0 sm:$0xff]  ;;  %s1803_s4 = smov [#allocation8]  }
  0xa9   :  { %s1270_s12 = sshll.u32 %s1803_s4, 4  ;;  %s1271_s12 = int_to_ptr.vmem [resolvable:$true] %s1270_s12 }
  0xaa   :  { %959 = vmatpush1.bf16.msra.mxu1 %v1652_v0  ;;  %s1766_s13 = scalar_lea.vmem %s1271_s12, 256  ;;  %p1771_p11 = scmp.lt.s32.totalorder %s1271_s12, %s1271_s12 }
  0xab   :  { %1045 = vmatpush1.bf16.msra.mxu0 %v1655_v1  ;;  %960 = vmatprep.subr.bf16.mxu1 %v1660_v2  ;;  %p1767_p10 = scmp.ne.s32.totalorder %s1271_s12, %s1766_s13  ;;  %p1772_p12 = scmp.lt.s32.totalorder %s1766_s13, %s1766_s13 }
  0xac   :  { %1046 = vmatprep.subr.bf16.mxu0 %v1663_v3 }
  0xad   :  { %p1773_p13 = por %p1772_p12, %p1771_p11 }
  0xae   :  { %961 = vmatpush1.bf16.msra.mxu1 %v1658_v4 }
  0xaf   :  { %1047 = vmatpush1.bf16.msra.mxu0 %v1661_v5  ;;  %962 = vmatprep.subr.bf16.mxu1 %v1666_v6  ;;  %p1774_p0 = pnand %p1773_p13, %p1767_p10 }
  0xb0   :  { %1048 = vmatprep.subr.bf16.mxu0 %v1669_v7 }
  0xb2   :  { %963 = vmatpush1.bf16.msra.mxu1 %v1664_v8 }
  0xb3   :  { %1049 = vmatpush1.bf16.msra.mxu0 %v1667_v9  ;;  %964 = vmatprep.subr.bf16.mxu1 %v1672_v10 }
  0xb4   :  { %1050 = vmatprep.subr.bf16.mxu0 %v1675_v11 }
  0xb6   :  { %965 = vmatpush1.bf16.msra.mxu1 %v1670_v12 }
  0xb7   :  { %1051 = vmatpush1.bf16.msra.mxu0 %v1673_v13  ;;  %1436 = vmatprep.subr.bf16.mxu1 %v1676_v14 }
  0xb9   :  { %967 = vmatmul.mubr.bf16.vlgmr.msra.gmra.mrb[0].mxu1 %v1285_v15 }
  0xba   :  { %1053 = vmatmul.mubr.bf16.vlgmr.msra.gmra.mrb[0].mxu0 %v1289_v16  ;;  %1437 = vmatpush3.bf16.msra.mxu1 %v1677_v17 }
  0xbb   :  { %1438 = vmatprep.subr.bf16.mxu1 %v1678_v18 }
  0xbe   :  { %1439 = vmatpush3.bf16.msra.mxu1 %v1679_v19 }
  0xbf   :  { %1440 = vmatprep.subr.bf16.mxu1 %v1680_v20 }
  0xc2   :  { %1441 = vmatpush3.bf16.msra.mxu1 %v1681_v21 }
  0xc3   :  { %1442 = vmatprep.subr.bf16.mxu1 %v1682_v22 }
  0xc6   :  { %1443 = vmatpush3.bf16.msra.mxu1 %v1683_v23 }
  0xc7   :  { %1444 = vmatprep.subr.bf16.mxu1 %v1684_v24 }
  0xca   :  { %1445 = vmatpush3.bf16.msra.mxu1 %v1685_v25 }
  0xcb   :  { %1446 = vmatprep.subr.bf16.mxu1 %v1686_v26 }
  0xce   :  { %1447 = vmatpush3.bf16.msra.mxu1 %v1687_v27 }
  0xcf   :  { %1448 = vmatprep.subr.bf16.mxu1 %v1688_v28 }
  0xd2   :  { %1449 = vmatpush3.bf16.msra.mxu1 %v1689_v29 }
  0xd3   :  { %1450 = vmatprep.subr.bf16.mxu1 %v1690_v30 }
  0xd6   :  { %1451 = vmatpush3.bf16.msra.mxu1 %v1691_v31 }
 0x18c   :  { %v968_v39 = vpop.f32.mrb[0].mxu1 }
 0x18d   :  { %v1054_v40 = vpop.f32.mrb[0].mxu0  ;;  %v1458_v41 = vadd.f32 %v968_v39, %v204_v37  ;;  %v970_v42 = vpop.f32.mrb[1].mxu1 }
 0x18e   :  { %v1056_v43 = vpop.f32.mrb[1].mxu0  ;;  %v1460_v44 = vadd.f32 %v970_v42, %v208_v38  ;;  %v972_v45 = vpop.f32.mrb[2].mxu1 }
 0x18f   :  { %v1058_v46 = vpop.f32.mrb[2].mxu0  ;;  %v1459_v47 = vadd.f32 %v1458_v41, %v1054_v40  ;;  %v1462_v48 = vadd.f32 %v972_v45, %v204_v37  ;;  %v974_v49 = vpop.f32.mrb[3].mxu1 }
 0x190   :  { %v1060_v50 = vpop.f32.mrb[3].mxu0  ;;  %v1461_v51 = vadd.f32 %v1460_v44, %v1056_v43  ;;  %v1464_v52 = vadd.f32 %v974_v49, %v208_v38 }
 0x191   :  { %v1463_v53 = vadd.f32 %v1462_v48, %v1058_v46  ;;  %v1063_v55 = vmax.f32 %v1459_v47, 0.0 }
 0x192   :  { %v1465_v54 = vadd.f32 %v1464_v52, %v1060_v50  ;;  %v1064_v57 = vmax.f32 %v1461_v51, 0.0 }
 0x193   :  { %v1065_v56 = vmax.f32 %v1463_v53, 0.0 }
 0x194   :  { %v1066_v58 = vmax.f32 %v1465_v54, 0.0 }
 0x195   :  { %v1067_v59 = vpack.c.bf16 %v1065_v56, %v1063_v55 }
 0x196   :  { %v1068_v60 = vpack.c.bf16 %v1066_v58, %v1064_v57 }
 0x198   :  { %1236 = vmatprep.mubr.bf16.mxu1 %v1068_v60 }
 0x199   :  { %1237 = vmatmul.mubr.bf16.vlgmr.msra.gmra.mrb[4].mxu1 %v1067_v59 }
 0x26c   :  { %v1452_v61 = vpop.f32.mrb[4].mxu1 }
 0x26d   :  { %v1453_v62 = vpop.f32.mrb[5].mxu1 }
 0x26e   :  { %v1454_v0 = vadd.f32 %v1453_v62, %v1452_v61  ;;  %v1455_v1 = vpop.f32.mrb[6].mxu1 }
 0x26f   :  { %v1456_v2 = vpop.f32.mrb[7].mxu1 }
 0x270   :  { %v1457_v3 = vadd.f32 %v1456_v2, %v1455_v1  ;;  %v1239_v4 = vadd.f32 %v1454_v0, %v1419_v63 }
 0x272   :  { %1245 = vmax.xlane.f32.xlu0 %v1239_v4  ;;  %v1242_v5 = vadd.f32 %v1457_v3, %v1419_v63 }
 0x276   :  { %1247 = vmax.xlane.f32.xlu0 %v1242_v5 }
 0x2ff   :  { %v1246_v6 = vpop.xlane.xlu0 %1245 }
 0x300   :  { %v1249_v7 = vsub.f32 %v1239_v4, %v1246_v6 }
 0x302   :  { %v1251_v8 = vmul.f32 1.442695, %v1249_v7 }
 0x303   :  { %v1248_v9 = vpop.xlane.xlu0 %1247 }
 0x304   :  { %1692 = vpow2.f32 %v1251_v8  ;;  %v1250_v10 = vsub.f32 %v1242_v5, %v1248_v9 }
 0x306   :  { %v1253_v11 = vmul.f32 1.442695, %v1250_v10 }
 0x308   :  { %1694 = vpow2.f32 %v1253_v11 }
 0x30e   :  { %v1693_v12 = vpop.eup %1692 }
 0x30f   :  { %1255 = vadd.xlane.f32.xlu1 %v1693_v12 }
 0x312   :  { %v1695_v13 = vpop.eup %1694 }
 0x313   :  { %1257 = vadd.xlane.f32.xlu1 %v1695_v13 }
 0x39c   :  { %v1256_v14 = vpop.xlane.xlu1 %1255 }
 0x39d   :  { %1696 = vrcp.f32 %v1256_v14 }
 0x3a0   :  { %v1258_v15 = vpop.xlane.xlu1 %1257 }
 0x3a1   :  { %1698 = vrcp.f32 %v1258_v15 }
 0x3a7   :  { %v1697_v16 = vpop.eup %1696 }
 0x3a8   :  { %v1260_v17 = vmul.f32 %v1697_v16, %v1693_v12 }
 0x3aa   :  { %1263 = vst [vmem:[#allocation8] sm:$0xff] %v1260_v17 }
 0x3ab   :  { %v1699_v18 = vpop.eup %1698 }
 0x3ac   :  { %v1262_v19 = vmul.f32 %v1699_v18, %v1695_v13 }
 0x3ae   :  { %1264 = vst [vmem:[#allocation8 + $0x8] sm:$0xff] %v1262_v19 }
 0x3af   :  { %1777 = shalt.err (!%p1774_p0)
}
 0x3b0   :  { %s1778_s16 = scalar_lea.hbm %s1915_s5, 256 }
 0x3b1   :  { %p1779_p1 = scmp.ne.s32.totalorder %s1915_s5, %s1778_s16  ;;  %p1782_p2 = scmp.lt.u32.totalorder %s1778_s16, %s1915_s5 }
 0x3b3   :  { %p1784_p3 = pnand %p1782_p2, %p1779_p1 }
 0x3b5   :  { %1787 = shalt.err (!%p1784_p3)
}
 0x3b6   :  { %1276 = dma.vmem_to_hbm [thread:$0]  %s1271_s12, 256, %s1915_s5, [#allocation4], %s1795_s28, %s1795_s28, %s1796_s29  }
 0x3b7   :  { %1792 = dma.done.wait [#allocation4], 256  }
 0x3b8   :  { %1793 = vsyncadd [#allocation4], 4294967040 }
 0x3b9   :  { %1280 = vsyncpa [#allocation3], 1 }
 0x3ba   :  { %1281 = vsyncpa [#allocation6], 1 }
 0x3bb   :  { %1282 = vsyncpa [#allocation4], 1 }

</bundles_post_ra>
